<compile_context>
chip_gen: v7x
topology: tpu7x:2x2x1
jax: 0.10.0
libtpu: 0.0.40
codegen_flags: <defaults>
</compile_context>

<pallas_src>
import numpy as np
import jax
import jax.numpy as jnp
from jax import lax
from jax.experimental import pallas as pl
from jax.experimental.pallas import tpu as pltpu

EPS = 1e-5
NEG_SLOPE = 0.01
# Set to jnp.bfloat16 on v6e/v7x for ~2-4x MXU throughput if ~1e-2 accuracy suffices.
MXU_DTYPE = jnp.float32


def _pick_tile_d(D, Cin, Cout, SDP, CK_PAD, budget_bytes=8 << 20):
    """Largest depth-tile (divisor of D) whose per-step VMEM working set fits budget.

    Budget: patch scratch + double-buffered slab + double-buffered output tile + mask.
    Kept conservative so the same tiling also fits v7x's smaller (64 MiB) VMEM.
    """
    best = 1
    for t in range(1, D + 1):
        if D % t:
            continue
        tq = t * SDP
        need = 4 * (CK_PAD * tq
                    + 2 * Cin * (t + 3) * SDP
                    + 2 * Cout * tq
                    + 2 * tq)
        if need <= budget_bytes:
            best = t
    return best


def conv_dropout_norm_nonlin(x, weight, bias, gamma, beta, *, tile_d=None):
    """x: (N, Cin, D, H, W) f32; weight: (Cout, Cin, 3, 3, 3); gamma/beta: (Cout,)."""
    del bias  # Exactly cancelled by the following InstanceNorm (mean/var shift-invariant).

    N, Cin, D, H, W = x.shape
    Cout = weight.shape[0]
    SH = W + 2                          # padded row stride
    SD = (H + 2) * (W + 2)              # padded plane size
    SDP = ((SD + 127) // 128) * 128     # lane-padded plane size (multiple of 128)
    CK = Cin * 27
    CK_PAD = ((CK + 127) // 128) * 128  # 128-aligned contraction dim

    if tile_d is None:
        tile_d = _pick_tile_d(D, Cin, Cout, SDP, CK_PAD)
    assert D % tile_d == 0, "tile_d must divide D"
    nDT = D // tile_d
    TQ = tile_d * SDP                   # lane width of one output tile (multiple of 128)
    SLABC = (tile_d + 3) * SDP          # slab columns: tile + depth halo + slack row

    # ---------------- wrapper-side prep (cheap XLA, ~1.2-1.4x input bytes) ----------------
    xf = x.astype(jnp.float32)
    xp = jnp.pad(xf, ((0, 0), (0, 0), (1, 2), (1, 1), (1, 1)))    # (N,Cin,D+3,H+2,W+2)
    xp = xp.reshape(N, Cin, D + 3, SD)
    xp = jnp.pad(xp, ((0, 0), (0, 0), (0, 0), (0, SDP - SD)))     # (N,Cin,D+3,SDP)
    slabs = jnp.stack(
        [xp[:, :, t * tile_d: t * tile_d + tile_d + 3, :] for t in range(nDT)], axis=1)
    slabs = slabs.reshape(N, nDT, Cin, SLABC)                     # overlapping depth slabs

    # weight -> (Cout, kd*kh*kw*Cin), zero-padded to CK_PAD columns (matches patch rows).
    wp = weight.astype(jnp.float32).transpose(0, 2, 3, 4, 1).reshape(Cout, CK)
    wp = jnp.pad(wp, ((0, 0), (0, CK_PAD - CK))).astype(MXU_DTYPE)

    # validity mask over one tile's lanes (H/W pad fringe + lane padding -> 0)
    mrow = np.zeros((SDP,), np.float32)
    for h in range(H):
        mrow[h * SH: h * SH + W] = 1.0
    mask = jnp.asarray(np.tile(mrow, tile_d)[None, :])            # (1, TQ)

    # Raise the scoped-VMEM limit only when the working set actually needs it.
    vmem_need = 4 * (CK_PAD * TQ + 2 * Cin * SLABC + 2 * Cout * TQ + 2 * TQ)
    vmem_limit = None
    if vmem_need > (12 << 20):
        vmem_limit = min(2 * vmem_need, 100 << 20)

    # ---------------- kernel A: conv (VMEM im2col + one MXU matmul) + stats ----------------
    def conv_stats_kernel(slab_ref, w_ref, mask_ref, y_ref, sum_ref, sq_ref, p_ref):
        t = pl.program_id(1)

        @pl.when(t == 0)
        def _init():
            sum_ref[...] = jnp.zeros_like(sum_ref)
            sq_ref[...] = jnp.zeros_like(sq_ref)

        # Zero the K-padding rows so the zero weight columns never meet junk.
        if CK_PAD > CK:
            p_ref[CK:, :] = jnp.zeros((CK_PAD - CK, TQ), MXU_DTYPE)

        # Build the (CK_PAD, TQ) patch matrix from 27 shifted views of the slab.
        for k in range(27):
            kd, r = divmod(k, 9)
            kh, kw = divmod(r, 3)
            off = kd * SDP + kh * SH + kw
            p_ref[k * Cin:(k + 1) * Cin, :] = (
                slab_ref[0, 0, :, off:off + TQ].astype(MXU_DTYPE))

        # Single MXU matmul: K = CK_PAD (128-aligned), lane dim TQ (>=512, lane-dense).
        # (M = Cout is small in this toy config; for production Cout, pad/batch it
        #  toward the MXU row count.)
        y = jnp.dot(w_ref[...], p_ref[...], preferred_element_type=jnp.float32)
        y_ref[0] = y

        m = mask_ref[...]                                   # (1, TQ), 1 on valid voxels
        ym = y * m
        sum_ref[0] += jnp.sum(ym, axis=1, keepdims=True)    # per-channel sum
        sq_ref[0] += jnp.sum(ym * y, axis=1, keepdims=True)  # per-channel sum of squares

    y_flat, ssum, ssq = pl.pallas_call(
        conv_stats_kernel,
        out_shape=(
            jax.ShapeDtypeStruct((N, Cout, D * SDP), jnp.float32),
            jax.ShapeDtypeStruct((N, Cout, 1), jnp.float32),
            jax.ShapeDtypeStruct((N, Cout, 1), jnp.float32),
        ),
        grid_spec=pltpu.PrefetchScalarGridSpec(
            num_scalar_prefetch=0,
            grid=(N, nDT),
            in_specs=[
                pl.BlockSpec((1, 1, Cin, SLABC), lambda n, t: (n, t, 0, 0)),
                pl.BlockSpec((Cout, CK_PAD), lambda n, t: (0, 0)),
                pl.BlockSpec((1, TQ), lambda n, t: (0, 0)),
            ],
            out_specs=[
                pl.BlockSpec((1, Cout, TQ), lambda n, t: (n, 0, t)),
                pl.BlockSpec((1, Cout, 1), lambda n, t: (n, 0, 0)),
                pl.BlockSpec((1, Cout, 1), lambda n, t: (n, 0, 0)),
            ],
            scratch_shapes=[pltpu.VMEM((CK_PAD, TQ), MXU_DTYPE)],
        ),
        compiler_params=pltpu.CompilerParams(
            dimension_semantics=("parallel", "arbitrary"),
            vmem_limit_bytes=vmem_limit),
    )(slabs, wp, mask)

    # ---- finalize instance-norm stats (tiny (N, Cout) math) and fold the affine ----
    # Note: E[x^2]-E[x]^2 in f32 can cancel for large |mean|/std; clamp to >= 0.
    cnt = float(D * H * W)
    mean = ssum[..., 0] / cnt
    ex2 = ssq[..., 0] / cnt
    var = jnp.maximum(ex2 - mean * mean, 0.0)
    scale = gamma[None, :].astype(jnp.float32) * lax.rsqrt(var + EPS)   # (N, Cout)
    shift = beta[None, :].astype(jnp.float32) - mean * scale

    # ---------------- kernel B: y*scale + shift (one FMA) + LeakyReLU ----------------
    def norm_act_kernel(y_ref, sc_ref, sh_ref, o_ref):
        yn = y_ref[0] * sc_ref[0] + sh_ref[0]
        o_ref[0] = jnp.where(yn >= 0, yn, NEG_SLOPE * yn)

    out_flat = pl.pallas_call(
        norm_act_kernel,
        out_shape=jax.ShapeDtypeStruct((N, Cout, D * SDP), jnp.float32),
        grid_spec=pltpu.PrefetchScalarGridSpec(
            num_scalar_prefetch=0,
            grid=(N, nDT),
            in_specs=[
                pl.BlockSpec((1, Cout, TQ), lambda n, t: (n, 0, t)),
                pl.BlockSpec((1, Cout, 1), lambda n, t: (n, 0, 0)),
                pl.BlockSpec((1, Cout, 1), lambda n, t: (n, 0, 0)),
            ],
            out_specs=pl.BlockSpec((1, Cout, TQ), lambda n, t: (n, 0, t)),
        ),
        compiler_params=pltpu.CompilerParams(
            dimension_semantics=("parallel", "parallel"),
            vmem_limit_bytes=vmem_limit),
    )(y_flat, scale[..., None], shift[..., None])

    # ---- strip the lane / H / W padding back to (N, Cout, D, H, W) ----
    out = out_flat.reshape(N, Cout, D, SDP)[..., :SD]
    out = out.reshape(N, Cout, D, H + 2, W + 2)[..., :H, :W]
    return out


def _reference(x, weight, bias, gamma, beta):
    y = lax.conv_general_dilated(
        x, weight, window_strides=(1, 1, 1),
        padding=((1, 1), (1, 1), (1, 1)),
        dimension_numbers=("NCDHW", "OIDHW", "NCDHW"))
    y = y + bias.reshape(1, -1, 1, 1, 1)
    mean = jnp.mean(y, axis=(2, 3, 4), keepdims=True)
    var = jnp.mean((y - mean) ** 2, axis=(2, 3, 4), keepdims=True)
    yn = (y - mean) * lax.rsqrt(var + EPS)
    yn = yn * gamma.reshape(1, -1, 1, 1, 1) + beta.reshape(1, -1, 1, 1, 1)
    return jnp.where(yn >= 0, yn, NEG_SLOPE * yn)


if __name__ == "__main__":
    key = jax.random.PRNGKey(0)
    k_x, k_w, k_b, k_g, k_be = jax.random.split(key, 5)

    N, Cin, Cout, D, H, W = 2, 4, 8, 16, 8, 8
    x = jax.random.normal(k_x, (N, Cin, D, H, W), dtype=jnp.float32)

    # Deterministic parameter init (shapes from nn.Conv3d / nn.InstanceNorm3d).
    fan_in = Cin * 27
    bound = 1.0 / np.sqrt(fan_in)
    weight = jax.random.uniform(k_w, (Cout, Cin, 3, 3, 3),
                                minval=-bound, maxval=bound, dtype=jnp.float32)
    bias = jax.random.uniform(k_b, (Cout,),
                              minval=-bound, maxval=bound, dtype=jnp.float32)
    gamma = jnp.ones((Cout,), jnp.float32) + 0.1 * jax.random.normal(k_g, (Cout,))
    beta = 0.1 * jax.random.normal(k_be, (Cout,), dtype=jnp.float32)

    # tile_d=8 -> 2 depth tiles per batch element: exercises the cross-tile stats
    # accumulation path as well as the lane-dense 1024-wide output tiles.
    out = conv_dropout_norm_nonlin(x, weight, bias, gamma, beta, tile_d=8)
    out = jax.block_until_ready(out)

    ref = jax.block_until_ready(_reference(x, weight, bias, gamma, beta))
    np.testing.assert_allclose(np.asarray(out), np.asarray(ref),
                               rtol=1e-3, atol=1e-3)

    print("KERNEL_OK")
</pallas_src>

<mosaic_0001>
module attributes {stable_mosaic.version = 11 : i64} {
  func.func @conv_stats_kernel(%arg0: i32, %arg1: i32, %arg2: memref<1x1x4x1408xf32, #tpu.memory_space<vmem>>, %arg3: memref<8x128xf32, #tpu.memory_space<vmem>>, %arg4: memref<1x1024xf32, #tpu.memory_space<vmem>>, %arg5: memref<1x8x1024xf32, #tpu.memory_space<vmem>>, %arg6: memref<1x8x1xf32, #tpu.memory_space<vmem>>, %arg7: memref<1x8x1xf32, #tpu.memory_space<vmem>>, %arg8: memref<128x1024xf32, #tpu.memory_space<vmem>>) attributes {dimension_semantics = [#tpu.dimension_semantics<parallel>, #tpu.dimension_semantics<arbitrary>], iteration_bounds = array<i64: 2, 2>, scalar_prefetch = 0 : i64, scratch_operands = 1 : i64, tpu.core_type = #tpu.core_type<tc>, window_params = [{transform_indices = @transform_0, window_bounds = array<i64: 1, 1, 4, 1408>}, {pipeline_mode = #tpu.pipeline_mode<synchronous>, transform_indices = @transform_1, window_bounds = array<i64: 8, 128>}, {pipeline_mode = #tpu.pipeline_mode<synchronous>, transform_indices = @transform_2, window_bounds = array<i64: 1, 1024>}, {transform_indices = @transform_3, window_bounds = array<i64: 1, 8, 1024>}, {transform_indices = @transform_4, window_bounds = array<i64: 1, 8, 1>}, {transform_indices = @transform_5, window_bounds = array<i64: 1, 8, 1>}]} {
    %c0_i32 = arith.constant 0 : i32
    %0 = arith.cmpi eq, %arg1, %c0_i32 : i32
    %1 = arith.extui %0 : i1 to i32
    %c0_i32_0 = arith.constant 0 : i32
    %2 = arith.cmpi ne, %1, %c0_i32_0 : i32
    scf.if %2 {
      %cst_137 = arith.constant 0.000000e+00 : f32
      %112 = vector.broadcast %cst_137 : f32 to vector<1x8x1xf32>
      %c0_138 = arith.constant 0 : index
      %c0_139 = arith.constant 0 : index
      %c0_140 = arith.constant 0 : index
      %113 = vector.load %arg6[%c0_138, %c0_139, %c0_140] : memref<1x8x1xf32, #tpu.memory_space<vmem>>, vector<1x8x1xf32>
      tpu.vector_store %arg6[%c0_138, %c0_139, %c0_140], %112 {strides = array<i32>} : memref<1x8x1xf32, #tpu.memory_space<vmem>>, vector<1x8x1xf32>,
      %cst_141 = arith.constant 0.000000e+00 : f32
      %114 = vector.broadcast %cst_141 : f32 to vector<1x8x1xf32>
      %c0_142 = arith.constant 0 : index
      %c0_143 = arith.constant 0 : index
      %c0_144 = arith.constant 0 : index
      %115 = vector.load %arg7[%c0_142, %c0_143, %c0_144] : memref<1x8x1xf32, #tpu.memory_space<vmem>>, vector<1x8x1xf32>
      tpu.vector_store %arg7[%c0_142, %c0_143, %c0_144], %114 {strides = array<i32>} : memref<1x8x1xf32, #tpu.memory_space<vmem>>, vector<1x8x1xf32>,
    } else {
    }
    %cst = arith.constant 0.000000e+00 : f32
    %3 = vector.broadcast %cst : f32 to vector<20x1024xf32>
    %c108 = arith.constant 108 : index
    %c0 = arith.constant 0 : index
    %4 = vector.load %arg8[%c108, %c0] : memref<128x1024xf32, #tpu.memory_space<vmem>>, vector<20x1024xf32>
    tpu.vector_store %arg8[%c108, %c0], %3 {strides = array<i32>} : memref<128x1024xf32, #tpu.memory_space<vmem>>, vector<20x1024xf32>,
    %c0_1 = arith.constant 0 : index
    %c0_2 = arith.constant 0 : index
    %c0_3 = arith.constant 0 : index
    %c0_4 = arith.constant 0 : index
    %5 = vector.load %arg2[%c0_1, %c0_2, %c0_3, %c0_4] : memref<1x1x4x1408xf32, #tpu.memory_space<vmem>>, vector<1x1x4x1024xf32>
    %6 = vector.shape_cast %5 : vector<1x1x4x1024xf32> to vector<4x1024xf32>
    %c0_5 = arith.constant 0 : index
    %c0_6 = arith.constant 0 : index
    %7 = vector.load %arg8[%c0_5, %c0_6] : memref<128x1024xf32, #tpu.memory_space<vmem>>, vector<4x1024xf32>
    tpu.vector_store %arg8[%c0_5, %c0_6], %6 {strides = array<i32>} : memref<128x1024xf32, #tpu.memory_space<vmem>>, vector<4x1024xf32>,
    %c0_7 = arith.constant 0 : index
    %c0_8 = arith.constant 0 : index
    %c0_9 = arith.constant 0 : index
    %c1 = arith.constant 1 : index
    %8 = vector.load %arg2[%c0_7, %c0_8, %c0_9, %c1] : memref<1x1x4x1408xf32, #tpu.memory_space<vmem>>, vector<1x1x4x1024xf32>
    %9 = vector.shape_cast %8 : vector<1x1x4x1024xf32> to vector<4x1024xf32>
    %c4 = arith.constant 4 : index
    %c0_10 = arith.constant 0 : index
    %10 = vector.load %arg8[%c4, %c0_10] : memref<128x1024xf32, #tpu.memory_space<vmem>>, vector<4x1024xf32>
    tpu.vector_store %arg8[%c4, %c0_10], %9 {strides = array<i32>} : memref<128x1024xf32, #tpu.memory_space<vmem>>, vector<4x1024xf32>,
    %c0_11 = arith.constant 0 : index
    %c0_12 = arith.constant 0 : index
    %c0_13 = arith.constant 0 : index
    %c2 = arith.constant 2 : index
    %11 = vector.load %arg2[%c0_11, %c0_12, %c0_13, %c2] : memref<1x1x4x1408xf32, #tpu.memory_space<vmem>>, vector<1x1x4x1024xf32>
    %12 = vector.shape_cast %11 : vector<1x1x4x1024xf32> to vector<4x1024xf32>
    %c8 = arith.constant 8 : index
    %c0_14 = arith.constant 0 : index
    %13 = vector.load %arg8[%c8, %c0_14] : memref<128x1024xf32, #tpu.memory_space<vmem>>, vector<4x1024xf32>
    tpu.vector_store %arg8[%c8, %c0_14], %12 {strides = array<i32>} : memref<128x1024xf32, #tpu.memory_space<vmem>>, vector<4x1024xf32>,
    %c0_15 = arith.constant 0 : index
    %c0_16 = arith.constant 0 : index
    %c0_17 = arith.constant 0 : index
    %c10 = arith.constant 10 : index
    %14 = vector.load %arg2[%c0_15, %c0_16, %c0_17, %c10] : memref<1x1x4x1408xf32, #tpu.memory_space<vmem>>, vector<1x1x4x1024xf32>
    %15 = vector.shape_cast %14 : vector<1x1x4x1024xf32> to vector<4x1024xf32>
    %c12 = arith.constant 12 : index
    %c0_18 = arith.constant 0 : index
    %16 = vector.load %arg8[%c12, %c0_18] : memref<128x1024xf32, #tpu.memory_space<vmem>>, vector<4x1024xf32>
    tpu.vector_store %arg8[%c12, %c0_18], %15 {strides = array<i32>} : memref<128x1024xf32, #tpu.memory_space<vmem>>, vector<4x1024xf32>,
    %c0_19 = arith.constant 0 : index
    %c0_20 = arith.constant 0 : index
    %c0_21 = arith.constant 0 : index
    %c11 = arith.constant 11 : index
    %17 = vector.load %arg2[%c0_19, %c0_20, %c0_21, %c11] : memref<1x1x4x1408xf32, #tpu.memory_space<vmem>>, vector<1x1x4x1024xf32>
    %18 = vector.shape_cast %17 : vector<1x1x4x1024xf32> to vector<4x1024xf32>
    %c16 = arith.constant 16 : index
    %c0_22 = arith.constant 0 : index
    %19 = vector.load %arg8[%c16, %c0_22] : memref<128x1024xf32, #tpu.memory_space<vmem>>, vector<4x1024xf32>
    tpu.vector_store %arg8[%c16, %c0_22], %18 {strides = array<i32>} : memref<128x1024xf32, #tpu.memory_space<vmem>>, vector<4x1024xf32>,
    %c0_23 = arith.constant 0 : index
    %c0_24 = arith.constant 0 : index
    %c0_25 = arith.constant 0 : index
    %c12_26 = arith.constant 12 : index
    %20 = vector.load %arg2[%c0_23, %c0_24, %c0_25, %c12_26] : memref<1x1x4x1408xf32, #tpu.memory_space<vmem>>, vector<1x1x4x1024xf32>
    %21 = vector.shape_cast %20 : vector<1x1x4x1024xf32> to vector<4x1024xf32>
    %c20 = arith.constant 20 : index
    %c0_27 = arith.constant 0 : index
    %22 = vector.load %arg8[%c20, %c0_27] : memref<128x1024xf32, #tpu.memory_space<vmem>>, vector<4x1024xf32>
    tpu.vector_store %arg8[%c20, %c0_27], %21 {strides = array<i32>} : memref<128x1024xf32, #tpu.memory_space<vmem>>, vector<4x1024xf32>,
    %c0_28 = arith.constant 0 : index
    %c0_29 = arith.constant 0 : index
    %c0_30 = arith.constant 0 : index
    %c20_31 = arith.constant 20 : index
    %23 = vector.load %arg2[%c0_28, %c0_29, %c0_30, %c20_31] : memref<1x1x4x1408xf32, #tpu.memory_space<vmem>>, vector<1x1x4x1024xf32>
    %24 = vector.shape_cast %23 : vector<1x1x4x1024xf32> to vector<4x1024xf32>
    %c24 = arith.constant 24 : index
    %c0_32 = arith.constant 0 : index
    %25 = vector.load %arg8[%c24, %c0_32] : memref<128x1024xf32, #tpu.memory_space<vmem>>, vector<4x1024xf32>
    tpu.vector_store %arg8[%c24, %c0_32], %24 {strides = array<i32>} : memref<128x1024xf32, #tpu.memory_space<vmem>>, vector<4x1024xf32>,
    %c0_33 = arith.constant 0 : index
    %c0_34 = arith.constant 0 : index
    %c0_35 = arith.constant 0 : index
    %c21 = arith.constant 21 : index
    %26 = vector.load %arg2[%c0_33, %c0_34, %c0_35, %c21] : memref<1x1x4x1408xf32, #tpu.memory_space<vmem>>, vector<1x1x4x1024xf32>
    %27 = vector.shape_cast %26 : vector<1x1x4x1024xf32> to vector<4x1024xf32>
    %c28 = arith.constant 28 : index
    %c0_36 = arith.constant 0 : index
    %28 = vector.load %arg8[%c28, %c0_36] : memref<128x1024xf32, #tpu.memory_space<vmem>>, vector<4x1024xf32>
    tpu.vector_store %arg8[%c28, %c0_36], %27 {strides = array<i32>} : memref<128x1024xf32, #tpu.memory_space<vmem>>, vector<4x1024xf32>,
    %c0_37 = arith.constant 0 : index
    %c0_38 = arith.constant 0 : index
    %c0_39 = arith.constant 0 : index
    %c22 = arith.constant 22 : index
    %29 = vector.load %arg2[%c0_37, %c0_38, %c0_39, %c22] : memref<1x1x4x1408xf32, #tpu.memory_space<vmem>>, vector<1x1x4x1024xf32>
    %30 = vector.shape_cast %29 : vector<1x1x4x1024xf32> to vector<4x1024xf32>
    %c32 = arith.constant 32 : index
    %c0_40 = arith.constant 0 : index
    %31 = vector.load %arg8[%c32, %c0_40] : memref<128x1024xf32, #tpu.memory_space<vmem>>, vector<4x1024xf32>
    tpu.vector_store %arg8[%c32, %c0_40], %30 {strides = array<i32>} : memref<128x1024xf32, #tpu.memory_space<vmem>>, vector<4x1024xf32>,
    %c0_41 = arith.constant 0 : index
    %c0_42 = arith.constant 0 : index
    %c0_43 = arith.constant 0 : index
    %c128 = arith.constant 128 : index
    %32 = vector.load %arg2[%c0_41, %c0_42, %c0_43, %c128] : memref<1x1x4x1408xf32, #tpu.memory_space<vmem>>, vector<1x1x4x1024xf32>
    %33 = vector.shape_cast %32 : vector<1x1x4x1024xf32> to vector<4x1024xf32>
    %c36 = arith.constant 36 : index
    %c0_44 = arith.constant 0 : index
    %34 = vector.load %arg8[%c36, %c0_44] : memref<128x1024xf32, #tpu.memory_space<vmem>>, vector<4x1024xf32>
    tpu.vector_store %arg8[%c36, %c0_44], %33 {strides = array<i32>} : memref<128x1024xf32, #tpu.memory_space<vmem>>, vector<4x1024xf32>,
    %c0_45 = arith.constant 0 : index
    %c0_46 = arith.constant 0 : index
    %c0_47 = arith.constant 0 : index
    %c129 = arith.constant 129 : index
    %35 = vector.load %arg2[%c0_45, %c0_46, %c0_47, %c129] : memref<1x1x4x1408xf32, #tpu.memory_space<vmem>>, vector<1x1x4x1024xf32>
    %36 = vector.shape_cast %35 : vector<1x1x4x1024xf32> to vector<4x1024xf32>
    %c40 = arith.constant 40 : index
    %c0_48 = arith.constant 0 : index
    %37 = vector.load %arg8[%c40, %c0_48] : memref<128x1024xf32, #tpu.memory_space<vmem>>, vector<4x1024xf32>
    tpu.vector_store %arg8[%c40, %c0_48], %36 {strides = array<i32>} : memref<128x1024xf32, #tpu.memory_space<vmem>>, vector<4x1024xf32>,
    %c0_49 = arith.constant 0 : index
    %c0_50 = arith.constant 0 : index
    %c0_51 = arith.constant 0 : index
    %c130 = arith.constant 130 : index
    %38 = vector.load %arg2[%c0_49, %c0_50, %c0_51, %c130] : memref<1x1x4x1408xf32, #tpu.memory_space<vmem>>, vector<1x1x4x1024xf32>
    %39 = vector.shape_cast %38 : vector<1x1x4x1024xf32> to vector<4x1024xf32>
    %c44 = arith.constant 44 : index
    %c0_52 = arith.constant 0 : index
    %40 = vector.load %arg8[%c44, %c0_52] : memref<128x1024xf32, #tpu.memory_space<vmem>>, vector<4x1024xf32>
    tpu.vector_store %arg8[%c44, %c0_52], %39 {strides = array<i32>} : memref<128x1024xf32, #tpu.memory_space<vmem>>, vector<4x1024xf32>,
    %c0_53 = arith.constant 0 : index
    %c0_54 = arith.constant 0 : index
    %c0_55 = arith.constant 0 : index
    %c138 = arith.constant 138 : index
    %41 = vector.load %arg2[%c0_53, %c0_54, %c0_55, %c138] : memref<1x1x4x1408xf32, #tpu.memory_space<vmem>>, vector<1x1x4x1024xf32>
    %42 = vector.shape_cast %41 : vector<1x1x4x1024xf32> to vector<4x1024xf32>
    %c48 = arith.constant 48 : index
    %c0_56 = arith.constant 0 : index
    %43 = vector.load %arg8[%c48, %c0_56] : memref<128x1024xf32, #tpu.memory_space<vmem>>, vector<4x1024xf32>
    tpu.vector_store %arg8[%c48, %c0_56], %42 {strides = array<i32>} : memref<128x1024xf32, #tpu.memory_space<vmem>>, vector<4x1024xf32>,
    %c0_57 = arith.constant 0 : index
    %c0_58 = arith.constant 0 : index
    %c0_59 = arith.constant 0 : index
    %c139 = arith.constant 139 : index
    %44 = vector.load %arg2[%c0_57, %c0_58, %c0_59, %c139] : memref<1x1x4x1408xf32, #tpu.memory_space<vmem>>, vector<1x1x4x1024xf32>
    %45 = vector.shape_cast %44 : vector<1x1x4x1024xf32> to vector<4x1024xf32>
    %c52 = arith.constant 52 : index
    %c0_60 = arith.constant 0 : index
    %46 = vector.load %arg8[%c52, %c0_60] : memref<128x1024xf32, #tpu.memory_space<vmem>>, vector<4x1024xf32>
    tpu.vector_store %arg8[%c52, %c0_60], %45 {strides = array<i32>} : memref<128x1024xf32, #tpu.memory_space<vmem>>, vector<4x1024xf32>,
    %c0_61 = arith.constant 0 : index
    %c0_62 = arith.constant 0 : index
    %c0_63 = arith.constant 0 : index
    %c140 = arith.constant 140 : index
    %47 = vector.load %arg2[%c0_61, %c0_62, %c0_63, %c140] : memref<1x1x4x1408xf32, #tpu.memory_space<vmem>>, vector<1x1x4x1024xf32>
    %48 = vector.shape_cast %47 : vector<1x1x4x1024xf32> to vector<4x1024xf32>
    %c56 = arith.constant 56 : index
    %c0_64 = arith.constant 0 : index
    %49 = vector.load %arg8[%c56, %c0_64] : memref<128x1024xf32, #tpu.memory_space<vmem>>, vector<4x1024xf32>
    tpu.vector_store %arg8[%c56, %c0_64], %48 {strides = array<i32>} : memref<128x1024xf32, #tpu.memory_space<vmem>>, vector<4x1024xf32>,
    %c0_65 = arith.constant 0 : index
    %c0_66 = arith.constant 0 : index
    %c0_67 = arith.constant 0 : index
    %c148 = arith.constant 148 : index
    %50 = vector.load %arg2[%c0_65, %c0_66, %c0_67, %c148] : memref<1x1x4x1408xf32, #tpu.memory_space<vmem>>, vector<1x1x4x1024xf32>
    %51 = vector.shape_cast %50 : vector<1x1x4x1024xf32> to vector<4x1024xf32>
    %c60 = arith.constant 60 : index
    %c0_68 = arith.constant 0 : index
    %52 = vector.load %arg8[%c60, %c0_68] : memref<128x1024xf32, #tpu.memory_space<vmem>>, vector<4x1024xf32>
    tpu.vector_store %arg8[%c60, %c0_68], %51 {strides = array<i32>} : memref<128x1024xf32, #tpu.memory_space<vmem>>, vector<4x1024xf32>,
    %c0_69 = arith.constant 0 : index
    %c0_70 = arith.constant 0 : index
    %c0_71 = arith.constant 0 : index
    %c149 = arith.constant 149 : index
    %53 = vector.load %arg2[%c0_69, %c0_70, %c0_71, %c149] : memref<1x1x4x1408xf32, #tpu.memory_space<vmem>>, vector<1x1x4x1024xf32>
    %54 = vector.shape_cast %53 : vector<1x1x4x1024xf32> to vector<4x1024xf32>
    %c64 = arith.constant 64 : index
    %c0_72 = arith.constant 0 : index
    %55 = vector.load %arg8[%c64, %c0_72] : memref<128x1024xf32, #tpu.memory_space<vmem>>, vector<4x1024xf32>
    tpu.vector_store %arg8[%c64, %c0_72], %54 {strides = array<i32>} : memref<128x1024xf32, #tpu.memory_space<vmem>>, vector<4x1024xf32>,
    %c0_73 = arith.constant 0 : index
    %c0_74 = arith.constant 0 : index
    %c0_75 = arith.constant 0 : index
    %c150 = arith.constant 150 : index
    %56 = vector.load %arg2[%c0_73, %c0_74, %c0_75, %c150] : memref<1x1x4x1408xf32, #tpu.memory_space<vmem>>, vector<1x1x4x1024xf32>
    %57 = vector.shape_cast %56 : vector<1x1x4x1024xf32> to vector<4x1024xf32>
    %c68 = arith.constant 68 : index
    %c0_76 = arith.constant 0 : index
    %58 = vector.load %arg8[%c68, %c0_76] : memref<128x1024xf32, #tpu.memory_space<vmem>>, vector<4x1024xf32>
    tpu.vector_store %arg8[%c68, %c0_76], %57 {strides = array<i32>} : memref<128x1024xf32, #tpu.memory_space<vmem>>, vector<4x1024xf32>,
    %c0_77 = arith.constant 0 : index
    %c0_78 = arith.constant 0 : index
    %c0_79 = arith.constant 0 : index
    %c256 = arith.constant 256 : index
    %59 = vector.load %arg2[%c0_77, %c0_78, %c0_79, %c256] : memref<1x1x4x1408xf32, #tpu.memory_space<vmem>>, vector<1x1x4x1024xf32>
    %60 = vector.shape_cast %59 : vector<1x1x4x1024xf32> to vector<4x1024xf32>
    %c72 = arith.constant 72 : index
    %c0_80 = arith.constant 0 : index
    %61 = vector.load %arg8[%c72, %c0_80] : memref<128x1024xf32, #tpu.memory_space<vmem>>, vector<4x1024xf32>
    tpu.vector_store %arg8[%c72, %c0_80], %60 {strides = array<i32>} : memref<128x1024xf32, #tpu.memory_space<vmem>>, vector<4x1024xf32>,
    %c0_81 = arith.constant 0 : index
    %c0_82 = arith.constant 0 : index
    %c0_83 = arith.constant 0 : index
    %c257 = arith.constant 257 : index
    %62 = vector.load %arg2[%c0_81, %c0_82, %c0_83, %c257] : memref<1x1x4x1408xf32, #tpu.memory_space<vmem>>, vector<1x1x4x1024xf32>
    %63 = vector.shape_cast %62 : vector<1x1x4x1024xf32> to vector<4x1024xf32>
    %c76 = arith.constant 76 : index
    %c0_84 = arith.constant 0 : index
    %64 = vector.load %arg8[%c76, %c0_84] : memref<128x1024xf32, #tpu.memory_space<vmem>>, vector<4x1024xf32>
    tpu.vector_store %arg8[%c76, %c0_84], %63 {strides = array<i32>} : memref<128x1024xf32, #tpu.memory_space<vmem>>, vector<4x1024xf32>,
    %c0_85 = arith.constant 0 : index
    %c0_86 = arith.constant 0 : index
    %c0_87 = arith.constant 0 : index
    %c258 = arith.constant 258 : index
    %65 = vector.load %arg2[%c0_85, %c0_86, %c0_87, %c258] : memref<1x1x4x1408xf32, #tpu.memory_space<vmem>>, vector<1x1x4x1024xf32>
    %66 = vector.shape_cast %65 : vector<1x1x4x1024xf32> to vector<4x1024xf32>
    %c80 = arith.constant 80 : index
    %c0_88 = arith.constant 0 : index
    %67 = vector.load %arg8[%c80, %c0_88] : memref<128x1024xf32, #tpu.memory_space<vmem>>, vector<4x1024xf32>
    tpu.vector_store %arg8[%c80, %c0_88], %66 {strides = array<i32>} : memref<128x1024xf32, #tpu.memory_space<vmem>>, vector<4x1024xf32>,
    %c0_89 = arith.constant 0 : index
    %c0_90 = arith.constant 0 : index
    %c0_91 = arith.constant 0 : index
    %c266 = arith.constant 266 : index
    %68 = vector.load %arg2[%c0_89, %c0_90, %c0_91, %c266] : memref<1x1x4x1408xf32, #tpu.memory_space<vmem>>, vector<1x1x4x1024xf32>
    %69 = vector.shape_cast %68 : vector<1x1x4x1024xf32> to vector<4x1024xf32>
    %c84 = arith.constant 84 : index
    %c0_92 = arith.constant 0 : index
    %70 = vector.load %arg8[%c84, %c0_92] : memref<128x1024xf32, #tpu.memory_space<vmem>>, vector<4x1024xf32>
    tpu.vector_store %arg8[%c84, %c0_92], %69 {strides = array<i32>} : memref<128x1024xf32, #tpu.memory_space<vmem>>, vector<4x1024xf32>,
    %c0_93 = arith.constant 0 : index
    %c0_94 = arith.constant 0 : index
    %c0_95 = arith.constant 0 : index
    %c267 = arith.constant 267 : index
    %71 = vector.load %arg2[%c0_93, %c0_94, %c0_95, %c267] : memref<1x1x4x1408xf32, #tpu.memory_space<vmem>>, vector<1x1x4x1024xf32>
    %72 = vector.shape_cast %71 : vector<1x1x4x1024xf32> to vector<4x1024xf32>
    %c88 = arith.constant 88 : index
    %c0_96 = arith.constant 0 : index
    %73 = vector.load %arg8[%c88, %c0_96] : memref<128x1024xf32, #tpu.memory_space<vmem>>, vector<4x1024xf32>
    tpu.vector_store %arg8[%c88, %c0_96], %72 {strides = array<i32>} : memref<128x1024xf32, #tpu.memory_space<vmem>>, vector<4x1024xf32>,
    %c0_97 = arith.constant 0 : index
    %c0_98 = arith.constant 0 : index
    %c0_99 = arith.constant 0 : index
    %c268 = arith.constant 268 : index
    %74 = vector.load %arg2[%c0_97, %c0_98, %c0_99, %c268] : memref<1x1x4x1408xf32, #tpu.memory_space<vmem>>, vector<1x1x4x1024xf32>
    %75 = vector.shape_cast %74 : vector<1x1x4x1024xf32> to vector<4x1024xf32>
    %c92 = arith.constant 92 : index
    %c0_100 = arith.constant 0 : index
    %76 = vector.load %arg8[%c92, %c0_100] : memref<128x1024xf32, #tpu.memory_space<vmem>>, vector<4x1024xf32>
    tpu.vector_store %arg8[%c92, %c0_100], %75 {strides = array<i32>} : memref<128x1024xf32, #tpu.memory_space<vmem>>, vector<4x1024xf32>,
    %c0_101 = arith.constant 0 : index
    %c0_102 = arith.constant 0 : index
    %c0_103 = arith.constant 0 : index
    %c276 = arith.constant 276 : index
    %77 = vector.load %arg2[%c0_101, %c0_102, %c0_103, %c276] : memref<1x1x4x1408xf32, #tpu.memory_space<vmem>>, vector<1x1x4x1024xf32>
    %78 = vector.shape_cast %77 : vector<1x1x4x1024xf32> to vector<4x1024xf32>
    %c96 = arith.constant 96 : index
    %c0_104 = arith.constant 0 : index
    %79 = vector.load %arg8[%c96, %c0_104] : memref<128x1024xf32, #tpu.memory_space<vmem>>, vector<4x1024xf32>
    tpu.vector_store %arg8[%c96, %c0_104], %78 {strides = array<i32>} : memref<128x1024xf32, #tpu.memory_space<vmem>>, vector<4x1024xf32>,
    %c0_105 = arith.constant 0 : index
    %c0_106 = arith.constant 0 : index
    %c0_107 = arith.constant 0 : index
    %c277 = arith.constant 277 : index
    %80 = vector.load %arg2[%c0_105, %c0_106, %c0_107, %c277] : memref<1x1x4x1408xf32, #tpu.memory_space<vmem>>, vector<1x1x4x1024xf32>
    %81 = vector.shape_cast %80 : vector<1x1x4x1024xf32> to vector<4x1024xf32>
    %c100 = arith.constant 100 : index
    %c0_108 = arith.constant 0 : index
    %82 = vector.load %arg8[%c100, %c0_108] : memref<128x1024xf32, #tpu.memory_space<vmem>>, vector<4x1024xf32>
    tpu.vector_store %arg8[%c100, %c0_108], %81 {strides = array<i32>} : memref<128x1024xf32, #tpu.memory_space<vmem>>, vector<4x1024xf32>,
    %c0_109 = arith.constant 0 : index
    %c0_110 = arith.constant 0 : index
    %c0_111 = arith.constant 0 : index
    %c278 = arith.constant 278 : index
    %83 = vector.load %arg2[%c0_109, %c0_110, %c0_111, %c278] : memref<1x1x4x1408xf32, #tpu.memory_space<vmem>>, vector<1x1x4x1024xf32>
    %84 = vector.shape_cast %83 : vector<1x1x4x1024xf32> to vector<4x1024xf32>
    %c104 = arith.constant 104 : index
    %c0_112 = arith.constant 0 : index
    %85 = vector.load %arg8[%c104, %c0_112] : memref<128x1024xf32, #tpu.memory_space<vmem>>, vector<4x1024xf32>
    tpu.vector_store %arg8[%c104, %c0_112], %84 {strides = array<i32>} : memref<128x1024xf32, #tpu.memory_space<vmem>>, vector<4x1024xf32>,
    %c0_113 = arith.constant 0 : index
    %c0_114 = arith.constant 0 : index
    %86 = vector.load %arg3[%c0_113, %c0_114] : memref<8x128xf32, #tpu.memory_space<vmem>>, vector<8x128xf32>
    %c0_115 = arith.constant 0 : index
    %c0_116 = arith.constant 0 : index
    %87 = vector.load %arg8[%c0_115, %c0_116] : memref<128x1024xf32, #tpu.memory_space<vmem>>, vector<128x1024xf32>
    %cst_117 = arith.constant dense<0.000000e+00> : vector<8x1024xf32>
    %88 = tpu.matmul %86, %87, %cst_117 {dimension_numbers = #tpu.dot_dimension_numbers<[1], [0], [0], [1], [0, 0, 1, 1], [], []>} : vector<8x128xf32>, vector<128x1024xf32>, vector<8x1024xf32> -> vector<8x1024xf32>
    %c0_118 = arith.constant 0 : index
    %c0_119 = arith.constant 0 : index
    %c0_120 = arith.constant 0 : index
    %89 = vector.load %arg5[%c0_118, %c0_119, %c0_120] : memref<1x8x1024xf32, #tpu.memory_space<vmem>>, vector<1x8x1024xf32>
    %90 = vector.shape_cast %89 : vector<1x8x1024xf32> to vector<8x1024xf32>
    %91 = vector.shape_cast %88 : vector<8x1024xf32> to vector<1x8x1024xf32>
    tpu.vector_store %arg5[%c0_118, %c0_119, %c0_120], %91 {strides = array<i32>} : memref<1x8x1024xf32, #tpu.memory_space<vmem>>, vector<1x8x1024xf32>,
    %c0_121 = arith.constant 0 : index
    %c0_122 = arith.constant 0 : index
    %92 = vector.load %arg4[%c0_121, %c0_122] : memref<1x1024xf32, #tpu.memory_space<vmem>>, vector<1x1024xf32>
    %93 = vector.broadcast %92 : vector<1x1024xf32> to vector<8x1024xf32>
    %94 = arith.mulf %88, %93 : vector<8x1024xf32>
    %c0_123 = arith.constant 0 : index
    %c0_124 = arith.constant 0 : index
    %c0_125 = arith.constant 0 : index
    %95 = vector.load %arg6[%c0_123, %c0_124, %c0_125] : memref<1x8x1xf32, #tpu.memory_space<vmem>>, vector<1x8x1xf32>
    %96 = vector.shape_cast %95 : vector<1x8x1xf32> to vector<8x1xf32>
    %cst_126 = arith.constant dense<0.000000e+00> : vector<8xf32>
    %97 = vector.multi_reduction <add>, %94, %cst_126 [1] : vector<8x1024xf32> to vector<8xf32>
    %98 = vector.shape_cast %97 : vector<8xf32> to vector<8x1xf32>
    %99 = arith.addf %96, %98 : vector<8x1xf32>
    %c0_127 = arith.constant 0 : index
    %c0_128 = arith.constant 0 : index
    %c0_129 = arith.constant 0 : index
    %100 = vector.load %arg6[%c0_127, %c0_128, %c0_129] : memref<1x8x1xf32, #tpu.memory_space<vmem>>, vector<1x8x1xf32>
    %101 = vector.shape_cast %100 : vector<1x8x1xf32> to vector<8x1xf32>
    %102 = vector.shape_cast %99 : vector<8x1xf32> to vector<1x8x1xf32>
    tpu.vector_store %arg6[%c0_127, %c0_128, %c0_129], %102 {strides = array<i32>} : memref<1x8x1xf32, #tpu.memory_space<vmem>>, vector<1x8x1xf32>,
    %c0_130 = arith.constant 0 : index
    %c0_131 = arith.constant 0 : index
    %c0_132 = arith.constant 0 : index
    %103 = vector.load %arg7[%c0_130, %c0_131, %c0_132] : memref<1x8x1xf32, #tpu.memory_space<vmem>>, vector<1x8x1xf32>
    %104 = vector.shape_cast %103 : vector<1x8x1xf32> to vector<8x1xf32>
    %105 = arith.mulf %94, %88 : vector<8x1024xf32>
    %cst_133 = arith.constant dense<0.000000e+00> : vector<8xf32>
    %106 = vector.multi_reduction <add>, %105, %cst_133 [1] : vector<8x1024xf32> to vector<8xf32>
    %107 = vector.shape_cast %106 : vector<8xf32> to vector<8x1xf32>
    %108 = arith.addf %104, %107 : vector<8x1xf32>
    %c0_134 = arith.constant 0 : index
    %c0_135 = arith.constant 0 : index
    %c0_136 = arith.constant 0 : index
    %109 = vector.load %arg7[%c0_134, %c0_135, %c0_136] : memref<1x8x1xf32, #tpu.memory_space<vmem>>, vector<1x8x1xf32>
    %110 = vector.shape_cast %109 : vector<1x8x1xf32> to vector<8x1xf32>
    %111 = vector.shape_cast %108 : vector<8x1xf32> to vector<1x8x1xf32>
    tpu.vector_store %arg7[%c0_134, %c0_135, %c0_136], %111 {strides = array<i32>} : memref<1x8x1xf32, #tpu.memory_space<vmem>>, vector<1x8x1xf32>,
    return
  }
  func.func @transform_0(%arg0: i32, %arg1: i32) -> (i32, i32, i32, i32) {
    %c0_i32 = arith.constant 0 : i32
    %c0_i32_0 = arith.constant 0 : i32
    %c0_i32_1 = arith.constant 0 : i32
    return %arg0, %arg1, %c0_i32, %c0_i32_0 : i32, i32, i32, i32
  }
  func.func @transform_1(%arg0: i32, %arg1: i32) -> (i32, i32) {
    %c0_i32 = arith.constant 0 : i32
    %c0_i32_0 = arith.constant 0 : i32
    %c0_i32_1 = arith.constant 0 : i32
    return %c0_i32, %c0_i32_0 : i32, i32
  }
  func.func @transform_2(%arg0: i32, %arg1: i32) -> (i32, i32) {
    %c0_i32 = arith.constant 0 : i32
    %c0_i32_0 = arith.constant 0 : i32
    %c0_i32_1 = arith.constant 0 : i32
    return %c0_i32, %c0_i32_0 : i32, i32
  }
  func.func @transform_3(%arg0: i32, %arg1: i32) -> (i32, i32, i32) {
    %c0_i32 = arith.constant 0 : i32
    %c0_i32_0 = arith.constant 0 : i32
    return %arg0, %c0_i32, %arg1 : i32, i32, i32
  }
  func.func @transform_4(%arg0: i32, %arg1: i32) -> (i32, i32, i32) {
    %c0_i32 = arith.constant 0 : i32
    %c0_i32_0 = arith.constant 0 : i32
    %c0_i32_1 = arith.constant 0 : i32
    return %arg0, %c0_i32, %c0_i32_0 : i32, i32, i32
  }
  func.func @transform_5(%arg0: i32, %arg1: i32) -> (i32, i32, i32) {
    %c0_i32 = arith.constant 0 : i32
    %c0_i32_0 = arith.constant 0 : i32
    %c0_i32_1 = arith.constant 0 : i32
    return %arg0, %c0_i32, %c0_i32_0 : i32, i32, i32
  }
}

</mosaic_0001>

<bundles_post_ra>
// kernel: tpu_custom_call.1
= control target key start
LH: loop header
LB: loop body
LE: loop exit
PB: predicated region body
PF: predicated region fallthrough
CT: control target
= control target key end

     0   :  { %s4169_s0 = inlined_call_operand.hbm [shape: f32[2,2,4,1408], index: 0, kind: input, shape index: {}]   ;;  %s4170_s1 = inlined_call_operand.hbm [shape: f32[8,128], index: 1, kind: input, shape index: {}]   ;;  %s4171_s2 = inlined_call_operand.hbm [shape: f32[1,1024], index: 2, kind: input, shape index: {}]   ;;  %s4172_s3 = inlined_call_operand.hbm [shape: f32[2,8,2048], index: 3, kind: output, shape index: {0}]   ;;  %s4173_s4 = inlined_call_operand.vmem [shape: f32[2,8,1], index: 4, kind: output, shape index: {1}]   ;;  %s4174_s5 = inlined_call_operand.vmem [shape: f32[2,8,1], index: 5, kind: output, shape index: {2}]  }
   0x1   :  { %4184 = sst [smem:[#allocation18_spill]] %s4170_s1 }
   0x2   :  { %4185 = sst [smem:[#allocation19_spill]] %s4171_s2 }
   0x3   :  { %11 = vsyncpa [#allocation4], 0 }
   0x4   :  { %13 = vsyncpa [#allocation4 + $0x1], 0 }
   0x5   :  { %14 = vsyncpa [#allocation7], 0 }
   0x6   :  { %15 = vsyncpa [#allocation5], 0 }
   0x7   :  { %17 = vsyncpa [#allocation5 + $0x1], 0  ;;  %s2997_s18 = smov 0   ;;  %s2999_s19 = smov 0  }
   0x8   :  { %s3001_s20 = smov 0   ;;  %s3003_s21 = smov 0  }
   0x9   :  { %s3005_s22 = smov 0   ;;  %s3007_s23 = smov 0  }
   0xa   :  { %s3009_s24 = smov 0   ;;  %s3011_s25 = smov 0  }
   0xb LB: > { %4186 = sst [smem:[#allocation13_spill]] %s2922_s18  ;;  %s2462_s26 = sadd.s32 4294967295, %s2950_s25   ;;  %s2950_s25 = sphi %s3011_s25, %s23_s25   ;;  %s2946_s24 = sphi %s3009_s24, %s4216_s24   ;;  %s2942_s23 = sphi %s3007_s23, %s4210_s23   ;;  %s2938_s22 = sphi %s3005_s22, %s4215_s22   ;;  %s2934_s21 = sphi %s3003_s21, %s4209_s21   ;;  %s2930_s20 = sphi %s3001_s20, %s4214_s20   ;;  %s2926_s19 = sphi %s2999_s19, %s4213_s19   ;;  %s2922_s18 = sphi %s2997_s18, %s4212_s18  }
   0xc   : > { %4187 = sst [smem:[#allocation14_spill]] %s2942_s23  ;;  %s2463_s27 = sadd.s32 4294967294, %s2950_s25  }
   0xd   : > { %p57_p0 = scmp.ne.s32.totalorder %s2926_s19, %s2922_s18  ;;  %p3041_p1 = scmp.eq.s32.totalorder %s2462_s26, 0 }
   0xe   : > { %p3045_p2 = scmp.eq.s32.totalorder %s2462_s26, 3  ;;  %p131_p3 = scmp.eq.s32.totalorder %s2463_s27, 3 }
   0xf   : > { %s4188_s28 = scalar_select %p3041_p1, 1, 0 }
  0x10   : > { %s4189_s29 = scalar_select %p3045_p2, 1, 0 }
  0x11   : > { %p3051_p4 = por %p3041_p1, %p57_p0  ;;  %p2464_p5 = scmp.ge.s32.totalorder %s2950_s25, 1 }
  0x12   : > { %p3056_p6 = por %p131_p3, %p57_p0  ;;  %p190_p7 = scmp.lt.s32.totalorder %s2950_s25, 5 }
  0x13   : > { %s4190_s30 = scalar_select %p3051_p4, 1, 0 }
  0x14   : > { %s4191_s6 = scalar_select %p3056_p6, 1, 0 }
  0x15   : > { %p3061_p8 = pnand %p2464_p5, %p190_p7  ;;  %s2952_s8 = smov [#allocation6]  }
  0x16   : > { %4192 = sst [smem:[#allocation15_spill]] %s4191_s6  ;;  %s203_s9 = sshll.u32 %s2952_s8, 4  ;;  %s204_s9 = int_to_ptr.vmem [resolvable:$true] %s203_s9 }
  0x17   : > { %s4193_s7 = scalar_select %p3061_p8, 1, 0 }
  0x18   : > { %p2626_p9 = pneg %p3061_p8  ;;  %s2953_s10 = smov [#allocation8]  }
  0x19   : > { %s214_s11 = sshll.u32 %s2953_s10, 4  ;;  %s4195_s1 = sld [smem:[#allocation18_spill]]  ;;  %s3073_s11 = int_to_ptr.vmem [resolvable:$true] %s214_s11 }
  0x1a   : > { %p3069_p10 = pnand %p2626_p9, %p3041_p1 }
  0x1c   : > { %p2764_p12 = pneg %p3069_p10 }
  0x1f   : > { %s2762_s15 = scalar_lea.hbm %s4195_s1, 128 }
  0x20   : > { %p2763_p11 = scmp.ne.s32.totalorder %s4195_s1, %s2762_s15  ;;  %p2769_p3 = scmp.lt.u32.totalorder %s2762_s15, %s4195_s1 }
  0x22   : > { %p2765_p13 = pnand %p2764_p12, %p2763_p11 }
  0x24   : > { %p2766_p0 = pneg %p2765_p13 }
  0x26   : > { %p2771_p5 = pnand %p2769_p3, %p2766_p0 }
  0x28   : > { %2774 = shalt.err (!%p2771_p5)
}
  0x29   : > { %s2775_s8 = scalar_lea.vmem %s204_s9, 128  ;;  %p2783_p1 = scmp.lt.s32.totalorder %s204_s9, %s204_s9 }
  0x2a   : > { %p2776_p7 = scmp.ne.s32.totalorder %s204_s9, %s2775_s8  ;;  %p2784_p4 = scmp.lt.s32.totalorder %s2775_s8, %s2775_s8 }
  0x2c   : > { %p2778_p9 = pnand %p2776_p7, %p2764_p12  ;;  %p2785_p8 = por %p2784_p4, %p2783_p1 }
  0x2e   : > { %p2779_p6 = pneg %p2778_p9 }
  0x30   : > { %p2786_p2 = pnand %p2785_p8, %p2779_p6 }
  0x32   : > { %2789 = shalt.err (!%p2786_p2)
}
  0x33   : > { %2629 = dma.hbm_to_vmem [thread:$0]  (!%p3069_p10), %s4195_s1, 128, %s204_s9, [#allocation7]  }
  0x34   : > { %s4196_s2 = sld [smem:[#allocation19_spill]] }
  0x3a   : > { %s2790_s16 = scalar_lea.hbm %s4196_s2, 128 }
  0x3b   : > { %p2791_p11 = scmp.ne.s32.totalorder %s4196_s2, %s2790_s16  ;;  %p2797_p2 = scmp.lt.u32.totalorder %s2790_s16, %s4196_s2 }
  0x3d   : > { %p2793_p1 = pnand %p2791_p11, %p2764_p12 }
  0x3f   : > { %p2794_p4 = pneg %p2793_p1 }
  0x41   : > { %p2799_p6 = pnand %p2797_p2, %p2794_p4 }
  0x43   : > { %2802 = shalt.err (!%p2799_p6)
}
  0x44   : > { %s2803_s9 = scalar_lea.vmem %s3073_s11, 128  ;;  %p2811_p3 = scmp.lt.s32.totalorder %s3073_s11, %s3073_s11 }
  0x45   : > { %p2804_p8 = scmp.ne.s32.totalorder %s3073_s11, %s2803_s9  ;;  %p2812_p5 = scmp.lt.s32.totalorder %s2803_s9, %s2803_s9 }
  0x47   : > { %p2806_p13 = pnand %p2804_p8, %p2764_p12  ;;  %p2813_p7 = por %p2812_p5, %p2811_p3 }
  0x49   : > { %p2807_p0 = pneg %p2806_p13 }
  0x4b   : > { %p2814_p9 = pnand %p2813_p7, %p2807_p0 }
  0x4d   : > { %2817 = shalt.err (!%p2814_p9)
}
  0x4e   : > { %2632 = dma.hbm_to_vmem [thread:$0]  (!%p3069_p10), %s4196_s2, 128, %s3073_s11, [#allocation7]  }
  0x4f   : > { %s32_s14 = sadd.s32 1, %s2942_s23  ;;  %s35_s15 = sadd.s32 1, %s2946_s24 }
  0x50   : > { %p33_p12 = scmp.ge.s32.totalorder %s32_s14, 2  ;;  %s44_s12 = sadd.s32 1, %s2930_s20 }
  0x51   : > { %p51_p11 = scmp.ne.s32.totalorder %s2930_s20, %s2926_s19  ;;  %p52_p1 = scmp.eq.s32.totalorder %s2950_s25, 0 }
  0x52   : > { %s4218_s14 = smov (%p33_p12, %s32_s14), 0  ;;  %s4220_s15 = smov (!%p33_p12, %s35_s15), %s2946_s24 }
  0x53   : > { %4197 = sst [smem:[#allocation16_spill]] %s4218_s14  ;;  %s40_s16 = ssub.s32 %s2942_s23, %s4218_s14 }
  0x54   : > { %p3133_p4 = por %p52_p1, %p51_p11  ;;  %p37_p10 = scmp.ge.s32.totalorder %s4220_s15, 2 }
  0x55   : > { %p4199_p2 = scmp.ne.s32.totalorder %s4189_s29, 0  ;;  %p2643_p8 = scmp.lt.s32.totalorder %s2950_s25, 4 }
  0x56   : > { %s225_s26 = sand.u32 1, %s2930_s20   ;;  %s4222_s15 = smov (%p37_p10, %s4220_s15), 0 }
  0x57   : > { %p3139_p6 = por %p4199_p2, %p51_p11  ;;  %4201 = sst [smem:[#allocation17_spill]] %s4222_s15 }
  0x58   : > { %s2610_s27 = smul.u32 44, %s225_s26  ;;  %s39_s8 = ssub.s32 %s2946_s24, %s4222_s15 }
  0x59   : > { %s2611_s9 = smul.u32 11, %s2942_s23  ;;  %s41_s10 = sor.u32 %s40_s16, %s39_s8 }
  0x5a   : > { %p42_p13 = scmp.eq.s32.totalorder %s41_s10, 0  ;;  %s2612_s13 = smul.u32 22, %s2946_s24 }
  0x5b   : > { %s229_s1 = scalar_lea.vmem [#allocation3], %s2610_s27  ;;  %p3153_p0 = pnand %p2643_p8, %p3133_p4 }
  0x5c   : > { %s239_s2 = sshll.u32 %s229_s1, 4  ;;  %s235_s6 = sadd.s32 %s2612_s13, %s2611_s9  ;;  %s3160_s2 = int_to_ptr.vmem [resolvable:$true] %s239_s2 }
  0x5d   : > { %s3158_s14 = scalar_select %p42_p13, %s2930_s20, %s44_s12  }
  0x5e   : > { %s2468_s18 = sshll.u32 %s235_s6, 6  ;;  %s226_s1 = scalar_lea.sflag [#allocation4], %s225_s26 }
  0x5f   : > { %s3165_s16 = scalar_lea.hbm %s4169_s0, %s2468_s18  ;;  %p2820_p5 = pneg %p3153_p0 }
  0x60   : > { %s2818_s17 = scalar_lea.hbm %s3165_s16, 704  ;;  %s2823_s27 = scalar_lea.hbm %s4169_s0, 2816 }
  0x61   : > { %p2819_p3 = scmp.ne.s32.totalorder %s3165_s16, %s2818_s17  ;;  %p2824_p12 = scmp.lt.u32.totalorder %s3165_s16, %s4169_s0 }
  0x62   : > { %p2825_p11 = scmp.lt.u32.totalorder %s2823_s27, %s2818_s17  ;;  %p2827_p4 = scmp.lt.u32.totalorder %s2818_s17, %s3165_s16 }
  0x63   : > { %p2821_p7 = pnand %p2820_p5, %p2819_p3 }
  0x64   : > { %p2826_p1 = por %p2825_p11, %p2824_p12 }
  0x65   : > { %p2822_p9 = pneg %p2821_p7 }
  0x66   : > { %p2828_p10 = por %p2827_p4, %p2826_p1 }
  0x68   : > { %p2829_p2 = pnand %p2828_p10, %p2822_p9 }
  0x6a   : > { %2832 = shalt.err (!%p2829_p2)
}
  0x6b   : > { %s2833_s15 = scalar_lea.vmem %s3160_s2, 704  ;;  %s2954_s26 = smov [#allocation3]  }
  0x6c   : > { %p2834_p8 = scmp.ne.s32.totalorder %s3160_s2, %s2833_s15  ;;  %s2838_s8 = sshll.u32 %s2954_s26, 4  ;;  %s2839_s8 = int_to_ptr.vmem [resolvable:$false] %s2838_s8 }
  0x6d   : > { %s2840_s9 = scalar_lea.vmem %s2839_s8, 1408  ;;  %p2841_p7 = scmp.lt.s32.totalorder %s3160_s2, %s2839_s8 }
  0x6e   : > { %p2836_p13 = pnand %p2834_p8, %p2820_p5  ;;  %p2842_p12 = scmp.lt.s32.totalorder %s2840_s9, %s2833_s15 }
  0x70   : > { %p2837_p3 = pneg %p2836_p13  ;;  %p2843_p11 = por %p2842_p12, %p2841_p7 }
  0x72   : > { %p2844_p1 = pnand %p2843_p11, %p2837_p3 }
  0x74   : > { %2847 = shalt.err (!%p2844_p1)
}
  0x75   : > { %2636 = dma.hbm_to_vmem [thread:$0]  (!%p3153_p0), %s3165_s16, 704, %s3160_s2, %s226_s1  }
  0x76   : > { %p4203_p9 = scmp.ne.s32.totalorder %s4193_s7, 0 }
  0x77   : > { %s3195_s10 = sand.u32 (!%p4203_p9), 1, %s2926_s19   ;;  %p4204_p5 = scmp.ne.s32.totalorder (!%p4203_p9), %s4190_s30, 0 }
  0x78   : > { %248 = sbr.rel (%p4203_p9) target bundleno = 1072 (0x430), region = 32  ;;  %s251_s17 = scalar_lea.sflag (!%p4203_p9), [#allocation4], %s3195_s10 }
  0x79   : > { %s2613_s13 = smul.u32 (!%p4203_p9), 44, %s3195_s10 }
  0x7b   : > { %s3199_s12 = scalar_lea.vmem (!%p4203_p9), [#allocation3], %s2613_s13 }
  0x7f   : > { %2909 = dma.done.wait (%p4204_p5), %s251_s17, 704  }
  0x80   : > { %2911 = vsyncadd (%p4204_p5), %s251_s17, 4294966592  ;;  %p4205_p0 = scmp.ne.s32.totalorder %s4188_s28, 0 }
  0x82   : > { %2913 = dma.done.wait (%p4205_p0), [#allocation7], 256  }
  0x83   : > { %2915 = vsyncadd (%p4205_p0), [#allocation7], 4294967040  ;;  %s2472_s2 = sshll.u32 %s3195_s10, 6  ;;  %p298_p4 = scmp.lt.s32.totalorder %s2938_s22, 1 }
  0x84   : > { %s3222_s18 = scalar_lea.vmem [#allocation9], %s2472_s2  ;;  %p2475_p10 = scmp.ne.s32.totalorder %s2934_s21, 0 }
  0x85   : > { %s299_s7 = scalar_select %p298_p4, %s2938_s22, 1 }
  0x86   : > { %309 = sbr.rel (%p2475_p10) target bundleno = 141 (0x8d), region = 48  ;;  %vm310_vm0 = vcmask (!%p2475_p10), 7168   ;;  %v2955_v0 = vmov (!%p2475_p10), 0.0  }
  0x87   : > { %s2473_s29 = sshll.u32 %s299_s7, 3 }
  0x88   : > { %s3215_s6 = scalar_lea.vmem %s4173_s4, %s2473_s29  ;;  %s3220_s23 = scalar_lea.vmem %s4174_s5, %s2473_s29 }
  0x89   : > { %311 = vst.msk [vmem:[%s3215_s6] sm:$0xff] (!%p2475_p10), %vm310_vm0, %v2955_v0  ;;  %312 = vst.msk [vmem:[%s3220_s23] sm:$0xff] (!%p2475_p10), %vm310_vm0, %v2955_v0 }
  0x8d PF: > { %v3228_v1 = vld [vmem:[%s3199_s12 + $0x8] sm:$0xff]  ;;  %v3231_v2 = vld [vmem:[%s3199_s12] sm:$0xff]  ;;  %v3248_v6 = vld [vmem:[%s3199_s12 + $0x10] sm:$0xff]  ;;  %s2956_s28 = smov 127   ;;  %s2957_s15 = smov 126   ;;  %vm394_vm1 = vcmask 1039360  }
  0x8e   : > { %v3235_v3 = vcombine.low %v3228_v1, %v3228_v1  ;;  %v3239_v4 = vcombine.low %v3231_v2, %v3231_v2  ;;  %v3243_v5 = vcombine.high %v3231_v2, %v3231_v2  ;;  %353 = vst [vmem:[#allocation2] sm:$0xf] %v3231_v2  ;;  %355 = vst [vmem:[#allocation2 + $0x10] sm:$0xf] %v3228_v1  ;;  %v3255_v8 = vld [vmem:[%s3199_s12 + $0x4] sm:$0xff]  ;;  %v3258_v9 = vld [vmem:[%s3199_s12 + $0xc] sm:$0xff] }
  0x8f   : > { %v3252_v7 = vcombine.high %v3228_v1, %v3228_v1  ;;  %v3266_v10 = vcombine.low %v3255_v8, %v3255_v8  ;;  %838 = vst [vmem:[#allocation2 + $0x108] sm:$0xf0] %v3255_v8  ;;  %840 = vst [vmem:[#allocation2 + $0x118] sm:$0xf0] %v3258_v9  ;;  %v3272_v11 = vld [vmem:[%s3199_s12 + $0x18] sm:$0xff]  ;;  %v3276_v12 = vcombine.low %v3258_v9, %v3258_v9  ;;  %v1298_v13 = vld [vmem:[%s3199_s12 + $0x10] sm:$0xff] }
  0x90   : > { %380 = vrot.lane.b32.xlu1 %v3235_v3, %s2956_s28  ;;  %376 = vrot.lane.b32.xlu0 %v3239_v4, %s2956_s28  ;;  %354 = vst [vmem:[#allocation2 + $0x8] sm:$0xf] %v3243_v5  ;;  %359 = vst [vmem:[#allocation2 + $0x30] sm:$0xf] %v3272_v11  ;;  %v3284_v14 = vcombine.high %v3272_v11, %v3272_v11  ;;  %v1306_v15 = vcombine.high %v1298_v13, %v1298_v13  ;;  %v3297_v17 = vld [vmem:[%s3199_s12 + $0x18] sm:$0xff]  ;;  %s2958_s26 = smov 118  }
  0x91   : > { %356 = vst [vmem:[#allocation2 + $0x18] sm:$0xf] %v3252_v7  ;;  %837 = vst [vmem:[#allocation2 + $0x100] sm:$0xf0] %v3266_v10  ;;  %v3293_v16 = vcombine.low %v3248_v6, %v3248_v6  ;;  %v3305_v18 = vcombine.low %v3297_v17, %v3297_v17  ;;  %v2728_v19 = vld [vmem:[%s3199_s12 + $0x20] ss:$0 sps:$4 sm:$0xff]   ;;  %v3377_v20 = vcombine.high %v3255_v8, %v3255_v8 }
  0x92   : > { %1315 = vst [vmem:[#allocation2 + $0x250] sm:$0xf] %v1298_v13  ;;  %357 = vst [vmem:[#allocation2 + $0x20] sm:$0xf] %v1298_v13  ;;  %s2959_s8 = smov 117   ;;  %s2960_s9 = smov 116   ;;  %v3397_v21 = vcombine.high %v3258_v9, %v3258_v9 }
  0x93   : > { %839 = vst [vmem:[#allocation2 + $0x110] sm:$0xf0] %v3276_v12  ;;  %1316 = vst [vmem:[#allocation2 + $0x258] sm:$0xf] %v1306_v15  ;;  %s2961_s13 = smov 108   ;;  %s2962_s17 = smov 107  }
  0x94   : > { %382 = vrot.lane.b32.xlu1 %v3228_v1, %s2956_s28  ;;  %378 = vrot.lane.b32.xlu0 %v3231_v2, %s2956_s28  ;;  %358 = vst [vmem:[#allocation2 + $0x28] sm:$0xf] %v1306_v15  ;;  %360 = vst [vmem:[#allocation2 + $0x38] sm:$0xf] %v3284_v14  ;;  %s2963_s2 = smov 106   ;;  %v3404_v22 = vld [vmem:[%s3199_s12 + $0x14] sm:$0xff] }
  0x95   : > { %v3412_v23 = vcombine.low %v3404_v22, %v3404_v22  ;;  %vm451_vm2 = vcmask 1031168   ;;  %vm509_vm3 = vcmask 965632   ;;  %v1297_v49 = vld [vmem:[%s3199_s12 + $0x8] sm:$0xff]  ;;  %vm566_vm4 = vcmask 957440   ;;  %s2478_s7 = sshll.u32 %s2938_s22, 4  ;;  %s2302_s1 = sshll.u32 %s3222_s18, 4  ;;  %s2303_s1 = int_to_ptr.vmem [resolvable:$true] %s2302_s1 }
  0x96   : > { %v1305_v52 = vcombine.high %v1297_v49, %v1297_v49  ;;  %1313 = vst [vmem:[#allocation2 + $0x240] sm:$0xf] %v1297_v49  ;;  %vm624_vm5 = vcmask 949248   ;;  %vm681_vm6 = vcmask 883712   ;;  %vm739_vm7 = vcmask 875520  }
  0x97   : > { %vm796_vm8 = vcmask 867328  }
  0x98   : > { %386 = vrot.lane.b32.xlu1 %v3248_v6, %s2956_s28  ;;  %384 = vrot.lane.b32.xlu0 %v3293_v16, %s2956_s28  ;;  %1314 = vst [vmem:[#allocation2 + $0x248] sm:$0xf] %v1305_v52 }
  0x9c   : > { %390 = vrot.lane.b32.xlu1 %v3297_v17, %s2956_s28  ;;  %388 = vrot.lane.b32.xlu0 %v3305_v18, %s2956_s28 }
  0xa0   : > { %433 = vrot.lane.b32.xlu1 %v3231_v2, %s2957_s15  ;;  %392 = vrot.lane.b32.xlu0 %v2728_v19, %s2956_s28 }
  0xa4   : > { %437 = vrot.lane.b32.xlu1 %v3228_v1, %s2957_s15  ;;  %435 = vrot.lane.b32.xlu0 %v3243_v5, %s2957_s15 }
  0xa8   : > { %495 = vrot.lane.b32.xlu1 %v3235_v3, %s2958_s26  ;;  %493 = vrot.lane.b32.xlu0 %v3231_v2, %s2958_s26 }
  0xac   : > { %439 = vrot.lane.b32.xlu1 %v3252_v7, %s2957_s15  ;;  %491 = vrot.lane.b32.xlu0 %v3239_v4, %s2958_s26 }
  0xb0   : > { %497 = vrot.lane.b32.xlu1 %v3228_v1, %s2958_s26  ;;  %441 = vrot.lane.b32.xlu0 %v3248_v6, %s2957_s15 }
  0xb4   : > { %550 = vrot.lane.b32.xlu1 %v3243_v5, %s2959_s8  ;;  %499 = vrot.lane.b32.xlu0 %v3293_v16, %s2958_s26 }
  0xb8   : > { %608 = vrot.lane.b32.xlu1 %v3231_v2, %s2960_s9  ;;  %552 = vrot.lane.b32.xlu0 %v3228_v1, %s2959_s8 }
  0xbc   : > { %665 = vrot.lane.b32.xlu1 %v3243_v5, %s2961_s13  ;;  %610 = vrot.lane.b32.xlu0 %v3235_v3, %s2960_s9 }
  0xc0   : > { %723 = vrot.lane.b32.xlu1 %v3231_v2, %s2962_s17  ;;  %667 = vrot.lane.b32.xlu0 %v3228_v1, %s2961_s13 }
  0xc4   : > { %548 = vrot.lane.b32.xlu1 %v3231_v2, %s2959_s8  ;;  %725 = vrot.lane.b32.xlu0 %v3235_v3, %s2962_s17 }
  0xc8   : > { %663 = vrot.lane.b32.xlu1 %v3231_v2, %s2961_s13  ;;  %606 = vrot.lane.b32.xlu0 %v3239_v4, %s2960_s9 }
  0xcc   : > { %554 = vrot.lane.b32.xlu1 %v3252_v7, %s2959_s8  ;;  %721 = vrot.lane.b32.xlu0 %v3239_v4, %s2962_s17 }
  0xd0   : > { %612 = vrot.lane.b32.xlu1 %v3228_v1, %s2960_s9  ;;  %556 = vrot.lane.b32.xlu0 %v3248_v6, %s2959_s8 }
  0xd4   : > { %669 = vrot.lane.b32.xlu1 %v3252_v7, %s2961_s13  ;;  %614 = vrot.lane.b32.xlu0 %v3293_v16, %s2960_s9 }
  0xd8   : > { %727 = vrot.lane.b32.xlu1 %v3228_v1, %s2962_s17  ;;  %671 = vrot.lane.b32.xlu0 %v3248_v6, %s2961_s13 }
  0xdc   : > { %780 = vrot.lane.b32.xlu1 %v3243_v5, %s2963_s2  ;;  %729 = vrot.lane.b32.xlu0 %v3293_v16, %s2962_s17 }
  0xe0   : > { %861 = vrot.lane.b32.xlu1 %v3377_v20, %s2956_s28  ;;  %782 = vrot.lane.b32.xlu0 %v3228_v1, %s2963_s2 }
  0xe4   : > { %918 = vrot.lane.b32.xlu1 %v3255_v8, %s2957_s15  ;;  %863 = vrot.lane.b32.xlu0 %v3258_v9, %s2956_s28 }
  0xe8   : > { %778 = vrot.lane.b32.xlu1 %v3231_v2, %s2963_s2  ;;  %920 = vrot.lane.b32.xlu0 %v3276_v12, %s2957_s15 }
  0xec   : > { %916 = vrot.lane.b32.xlu1 %v3266_v10, %s2957_s15  ;;  %859 = vrot.lane.b32.xlu0 %v3255_v8, %s2956_s28 }
  0xf0   : > { %786 = vrot.lane.b32.xlu1 %v3248_v6, %s2963_s2  ;;  %784 = vrot.lane.b32.xlu0 %v3252_v7, %s2963_s2 }
  0xf4   : > { %867 = vrot.lane.b32.xlu1 %v3404_v22, %s2956_s28  ;;  %865 = vrot.lane.b32.xlu0 %v3397_v21, %s2956_s28 }
  0xf8   : > { %924 = vrot.lane.b32.xlu1 %v3412_v23, %s2957_s15  ;;  %922 = vrot.lane.b32.xlu0 %v3258_v9, %s2957_s15 }
  0xfc   : > { %976 = vrot.lane.b32.xlu1 %v3258_v9, %s2958_s26  ;;  %974 = vrot.lane.b32.xlu0 %v3377_v20, %s2958_s26 }
 0x100   : > { %1033 = vrot.lane.b32.xlu1 %v3276_v12, %s2959_s8  ;;  %1031 = vrot.lane.b32.xlu0 %v3255_v8, %s2959_s8 }
 0x102   : > { %v381_v24 = vpop.permute.xlu1 %380  ;;  %v377_v25 = vpop.permute.xlu0 %376 }
 0x104   : > { %1089 = vrot.lane.b32.xlu1 %v3258_v9, %s2960_s9  ;;  %1087 = vrot.lane.b32.xlu0 %v3377_v20, %s2960_s9 }
 0x106   : > { %v383_v26 = vpop.permute.xlu1 %382  ;;  %v379_v27 = vpop.permute.xlu0 %378 }
 0x107   : > { %v397_v28 = vsel %vm394_vm1, %v381_v24, %v383_v26  ;;  %v395_v29 = vsel %vm394_vm1, %v377_v25, %v379_v27  ;;  %v396_v30 = vsel %vm394_vm1, %v379_v27, %v381_v24 }
 0x108   : > { %413 = vst [vmem:[#allocation2 + $0x10] sm:$0xf0] %v397_v28  ;;  %411 = vst [vmem:[#allocation2] sm:$0xf0] %v395_v29  ;;  %1146 = vrot.lane.b32.xlu1 %v3276_v12, %s2961_s13  ;;  %1144 = vrot.lane.b32.xlu0 %v3255_v8, %s2961_s13 }
 0x109   : > { %412 = vst [vmem:[#allocation2 + $0x8] sm:$0xf0] %v396_v30 }
 0x10a   : > { %v387_v31 = vpop.permute.xlu1 %386  ;;  %v385_v32 = vpop.permute.xlu0 %384 }
 0x10b   : > { %v398_v33 = vsel %vm394_vm1, %v383_v26, %v385_v32  ;;  %v399_v34 = vsel %vm394_vm1, %v385_v32, %v387_v31 }
 0x10c   : > { %414 = vst [vmem:[#allocation2 + $0x18] sm:$0xf0] %v398_v33  ;;  %415 = vst [vmem:[#allocation2 + $0x20] sm:$0xf0] %v399_v34  ;;  %1029 = vrot.lane.b32.xlu1 %v3266_v10, %s2959_s8  ;;  %972 = vrot.lane.b32.xlu0 %v3255_v8, %s2958_s26 }
 0x10e   : > { %v391_v35 = vpop.permute.xlu1 %390  ;;  %v389_v36 = vpop.permute.xlu0 %388 }
 0x10f   : > { %v400_v37 = vsel %vm394_vm1, %v387_v31, %v389_v36  ;;  %v401_v38 = vsel %vm394_vm1, %v389_v36, %v391_v35  ;;  %v1774_v2 = vld [vmem:[#allocation2] sm:$0xff]  ;;  %v1776_v29 = vld [vmem:[#allocation2 + $0x10] sm:$0xff] }
 0x110   : > { %416 = vst [vmem:[#allocation2 + $0x28] sm:$0xf0] %v400_v37  ;;  %417 = vst [vmem:[#allocation2 + $0x30] sm:$0xf0] %v401_v38  ;;  %1142 = vrot.lane.b32.xlu1 %v3266_v10, %s2961_s13  ;;  %1085 = vrot.lane.b32.xlu0 %v3255_v8, %s2960_s9  ;;  %v1775_v59 = vld [vmem:[#allocation2 + $0x8] sm:$0xff] }
 0x112   : > { %v434_v39 = vpop.permute.xlu1 %433  ;;  %v393_v40 = vpop.permute.xlu0 %392 }
 0x113   : > { %v402_v41 = vsel %vm394_vm1, %v391_v35, %v393_v40  ;;  %v1777_v26 = vld [vmem:[#allocation2 + $0x18] sm:$0xff] }
 0x114   : > { %418 = vst [vmem:[#allocation2 + $0x38] sm:$0xf0] %v402_v41  ;;  %980 = vrot.lane.b32.xlu1 %v3404_v22, %s2958_s26  ;;  %978 = vrot.lane.b32.xlu0 %v3397_v21, %s2958_s26 }
 0x116   : > { %v438_v42 = vpop.permute.xlu1 %437  ;;  %v436_v43 = vpop.permute.xlu0 %435 }
 0x117   : > { %v452_v44 = vsel %vm451_vm2, %v434_v39, %v436_v43  ;;  %v453_v45 = vsel %vm451_vm2, %v436_v43, %v438_v42  ;;  %v3513_v39 = vld [vmem:[%s3199_s12 + $0x1c] sm:$0xff] }
 0x118   : > { %468 = vst [vmem:[#allocation2 + $0x40] sm:$0xf] %v452_v44  ;;  %469 = vst [vmem:[#allocation2 + $0x48] sm:$0xf] %v453_v45  ;;  %1037 = vrot.lane.b32.xlu1 %v3412_v23, %s2959_s8  ;;  %1035 = vrot.lane.b32.xlu0 %v3258_v9, %s2959_s8  ;;  %v3522_v41 = vcombine.low %v3513_v39, %v3513_v39 }
 0x119   : > { %844 = vst [vmem:[#allocation2 + $0x138] sm:$0xf0] %v3513_v39 }
 0x11a   : > { %v496_v46 = vpop.permute.xlu1 %495  ;;  %v494_v47 = vpop.permute.xlu0 %493  ;;  %843 = vst [vmem:[#allocation2 + $0x130] sm:$0xf0] %v3522_v41 }
 0x11b   : > { %v511_v48 = vsel %vm509_vm3, %v494_v47, %v496_v46 }
 0x11c   : > { %527 = vst [vmem:[#allocation2 + $0x48] sm:$0xf0] %v511_v48  ;;  %1093 = vrot.lane.b32.xlu1 %v3404_v22, %s2960_s9  ;;  %1091 = vrot.lane.b32.xlu0 %v3397_v21, %s2960_s9 }
 0x11e   : > { %v440_v50 = vpop.permute.xlu1 %439  ;;  %v492_v51 = vpop.permute.xlu0 %491 }
 0x11f   : > { %v454_v53 = vsel %vm451_vm2, %v438_v42, %v440_v50  ;;  %v510_v54 = vsel %vm509_vm3, %v492_v51, %v494_v47 }
 0x120   : > { %470 = vst [vmem:[#allocation2 + $0x50] sm:$0xf] %v454_v53  ;;  %526 = vst [vmem:[#allocation2 + $0x40] sm:$0xf0] %v510_v54  ;;  %1150 = vrot.lane.b32.xlu1 %v3412_v23, %s2961_s13  ;;  %1148 = vrot.lane.b32.xlu0 %v3258_v9, %s2961_s13 }
 0x122   : > { %v498_v55 = vpop.permute.xlu1 %497  ;;  %v3472_v56 = vpop.permute.xlu0 %441 }
 0x123   : > { %v512_v57 = vsel %vm509_vm3, %v496_v46, %v498_v55  ;;  %v455_v58 = vsel %vm451_vm2, %v440_v50, %v3472_v56  ;;  %v1783_v60 = vld [vmem:[#allocation2 + $0x48] sm:$0xff] }
 0x124   : > { %528 = vst [vmem:[#allocation2 + $0x50] sm:$0xf0] %v512_v57  ;;  %471 = vst [vmem:[#allocation2 + $0x58] sm:$0xf] %v455_v58  ;;  %1202 = vrot.lane.b32.xlu1 %v3258_v9, %s2962_s17  ;;  %1200 = vrot.lane.b32.xlu0 %v3377_v20, %s2962_s17  ;;  %v2482_v61 = vpack.c.bf16 %v1783_v60, %v1775_v59 }
 0x126   : > { %v551_v62 = vpop.permute.xlu1 %550  ;;  %v3481_v63 = vpop.permute.xlu0 %499  ;;  %2483 = vmatprep.subr.bf16.mxu0 %v2482_v61 }
 0x127   : > { %v513_v0 = vsel %vm509_vm3, %v498_v55, %v3481_v63  ;;  %v1782_v4 = vld [vmem:[#allocation2 + $0x40] sm:$0xff] }
 0x128   : > { %529 = vst [vmem:[#allocation2 + $0x58] sm:$0xf0] %v513_v0  ;;  %1259 = vrot.lane.b32.xlu1 %v3276_v12, %s2963_s2  ;;  %1257 = vrot.lane.b32.xlu0 %v3255_v8, %s2963_s2  ;;  %v2484_v5 = vpack.c.bf16 %v1782_v4, %v1774_v2 }
 0x12a   : > { %v609_v13 = vpop.permute.xlu1 %608  ;;  %v553_v15 = vpop.permute.xlu0 %552  ;;  %2485 = vmatpush1.bf16.msra.mxu0 %v2484_v5 }
 0x12b   : > { %v568_v19 = vsel %vm566_vm4, %v551_v62, %v553_v15  ;;  %v1784_v24 = vld [vmem:[#allocation2 + $0x50] sm:$0xff] }
 0x12c   : > { %584 = vst [vmem:[#allocation2 + $0x88] sm:$0xf] %v568_v19  ;;  %1340 = vrot.lane.b32.xlu1 %v3293_v16, %s2956_s28  ;;  %1338 = vrot.lane.b32.xlu0 %v3228_v1, %s2956_s28  ;;  %v2516_v30 = vpack.c.bf16 %v1784_v24, %v1776_v29 }
 0x12e   : > { %v666_v20 = vpop.permute.xlu1 %665  ;;  %v611_v12 = vpop.permute.xlu0 %610 }
 0x12f   : > { %v626_v25 = vsel %vm624_vm5, %v609_v13, %v611_v12  ;;  %v1785_v27 = vld [vmem:[#allocation2 + $0x58] sm:$0xff] }
 0x130   : > { %642 = vst [vmem:[#allocation2 + $0x88] sm:$0xf0] %v626_v25  ;;  %1255 = vrot.lane.b32.xlu1 %v3266_v10, %s2963_s2  ;;  %1198 = vrot.lane.b32.xlu0 %v3255_v8, %s2962_s17  ;;  %v2514_v28 = vpack.c.bf16 %v1785_v27, %v1777_v26 }
 0x132   : > { %v724_v31 = vpop.permute.xlu1 %723  ;;  %v668_v32 = vpop.permute.xlu0 %667  ;;  %2515 = vmatprep.subr.bf16.mxu1 %v2514_v28 }
 0x133   : > { %v683_v33 = vsel %vm681_vm6, %v666_v20, %v668_v32  ;;  %2517 = vmatpush1.bf16.msra.mxu1 %v2516_v30 }
 0x134   : > { %699 = vst [vmem:[#allocation2 + $0xc8] sm:$0xf] %v683_v33  ;;  %1204 = vrot.lane.b32.xlu1 %v3397_v21, %s2962_s17  ;;  %1336 = vrot.lane.b32.xlu0 %v3235_v3, %s2956_s28 }
 0x136   : > { %v549_v8 = vpop.permute.xlu1 %548  ;;  %v726_v10 = vpop.permute.xlu0 %725 }
 0x137   : > { %v567_v34 = vsel %vm566_vm4, %v549_v8, %v551_v62  ;;  %v741_v35 = vsel %vm739_vm7, %v724_v31, %v726_v10  ;;  %v1791_v44 = vld [vmem:[#allocation2 + $0x88] sm:$0xff] }
 0x138   : > { %583 = vst [vmem:[#allocation2 + $0x80] sm:$0xf] %v567_v34  ;;  %757 = vst [vmem:[#allocation2 + $0xc8] sm:$0xf0] %v741_v35  ;;  %1261 = vrot.lane.b32.xlu1 %v3258_v9, %s2963_s2  ;;  %1206 = vrot.lane.b32.xlu0 %v3404_v22, %s2962_s17 }
 0x13a   : > { %v664_v36 = vpop.permute.xlu1 %663  ;;  %v607_v21 = vpop.permute.xlu0 %606 }
 0x13b   : > { %v682_v37 = vsel %vm681_vm6, %v664_v36, %v666_v20  ;;  %v625_v38 = vsel %vm624_vm5, %v607_v21, %v609_v13 }
 0x13c   : > { %698 = vst [vmem:[#allocation2 + $0xc0] sm:$0xf] %v682_v37  ;;  %641 = vst [vmem:[#allocation2 + $0x80] sm:$0xf0] %v625_v38  ;;  %1342 = vrot.lane.b32.xlu1 %v3248_v6, %s2956_s28  ;;  %1263 = vrot.lane.b32.xlu0 %v3412_v23, %s2963_s2 }
 0x13e   : > { %v555_v9 = vpop.permute.xlu1 %554  ;;  %v722_v40 = vpop.permute.xlu0 %721 }
 0x13f   : > { %v569_v42 = vsel %vm566_vm4, %v553_v15, %v555_v9  ;;  %v740_v43 = vsel %vm739_vm7, %v722_v40, %v724_v31  ;;  %v1799_v45 = vld [vmem:[#allocation2 + $0xc8] sm:$0xff]  ;;  %v3569_v15 = vcombine.high %v3248_v6, %v3248_v6 }
 0x140   : > { %585 = vst [vmem:[#allocation2 + $0x90] sm:$0xf] %v569_v42  ;;  %756 = vst [vmem:[#allocation2 + $0xc0] sm:$0xf0] %v740_v43  ;;  %1394 = vrot.lane.b32.xlu1 %v3252_v7, %s2957_s15  ;;  %1344 = vrot.lane.b32.xlu0 %v3305_v18, %s2956_s28  ;;  %v2486_v23 = vpack.c.bf16 %v1799_v45, %v1791_v44 }
 0x142   : > { %v613_v46 = vpop.permute.xlu1 %612  ;;  %v3531_v47 = vpop.permute.xlu0 %556  ;;  %2487 = vmatprep.subr.bf16.mxu0 %v2486_v23 }
 0x143   : > { %v627_v48 = vsel %vm624_vm5, %v611_v12, %v613_v46  ;;  %v570_v49 = vsel %vm566_vm4, %v555_v9, %v3531_v47  ;;  %v1790_v54 = vld [vmem:[#allocation2 + $0x80] sm:$0xff] }
 0x144   : > { %643 = vst [vmem:[#allocation2 + $0x90] sm:$0xf0] %v627_v48  ;;  %586 = vst [vmem:[#allocation2 + $0x98] sm:$0xf] %v570_v49  ;;  %1451 = vrot.lane.b32.xlu1 %v3228_v1, %s2958_s26  ;;  %1396 = vrot.lane.b32.xlu0 %v3248_v6, %s2957_s15 }
 0x146   : > { %v670_v50 = vpop.permute.xlu1 %669  ;;  %v3540_v51 = vpop.permute.xlu0 %614 }
 0x147   : > { %v684_v52 = vsel %vm681_vm6, %v668_v32, %v670_v50  ;;  %v628_v53 = vsel %vm624_vm5, %v613_v46, %v3540_v51  ;;  %v1798_v55 = vld [vmem:[#allocation2 + $0xc0] sm:$0xff] }
 0x148   : > { %700 = vst [vmem:[#allocation2 + $0xd0] sm:$0xf] %v684_v52  ;;  %644 = vst [vmem:[#allocation2 + $0x98] sm:$0xf0] %v628_v53  ;;  %1507 = vrot.lane.b32.xlu1 %v3252_v7, %s2959_s8  ;;  %1453 = vrot.lane.b32.xlu0 %v3293_v16, %s2958_s26  ;;  %v2488_v57 = vpack.c.bf16 %v1798_v55, %v1790_v54 }
 0x14a   : > { %v728_v58 = vpop.permute.xlu1 %727  ;;  %v3549_v59 = vpop.permute.xlu0 %671  ;;  %2489 = vmatpush1.bf16.msra.mxu0 %v2488_v57 }
 0x14b   : > { %v742_v60 = vsel %vm739_vm7, %v726_v10, %v728_v58  ;;  %v685_v61 = vsel %vm681_vm6, %v670_v50, %v3549_v59  ;;  %v1792_v28 = vld [vmem:[#allocation2 + $0x90] sm:$0xff]  ;;  %v2964_v50 = vmov 0.0  }
 0x14c   : > { %758 = vst [vmem:[#allocation2 + $0xd0] sm:$0xf0] %v742_v60  ;;  %701 = vst [vmem:[#allocation2 + $0xd8] sm:$0xf] %v685_v61  ;;  %1564 = vrot.lane.b32.xlu1 %v3228_v1, %s2960_s9  ;;  %1509 = vrot.lane.b32.xlu0 %v3248_v6, %s2959_s8 }
 0x14d   : > { %314 = vst [vmem:[#allocation2 + $0x348] sm:$0xf0] %v2964_v50  ;;  %313 = vst [vmem:[#allocation2 + $0x340] sm:$0xf0] %v2964_v50  ;;  %1966 = vmatprep.mubr.f32.mxu0 %v2964_v50  ;;  %2037 = vmatprep.mubr.f32.mxu1 %v2964_v50 }
 0x14e   : > { %v781_v62 = vpop.permute.xlu1 %780  ;;  %v3558_v0 = vpop.permute.xlu0 %729  ;;  %315 = vst [vmem:[#allocation2 + $0x350] sm:$0xf0] %v2964_v50  ;;  %316 = vst [vmem:[#allocation2 + $0x358] sm:$0xf0] %v2964_v50 }
 0x14f   : > { %v743_v2 = vsel %vm739_vm7, %v728_v58, %v3558_v0  ;;  %v1793_v25 = vld [vmem:[#allocation2 + $0x98] sm:$0xff]  ;;  %317 = vst [vmem:[#allocation2 + $0x360] sm:$0xf0] %v2964_v50  ;;  %318 = vst [vmem:[#allocation2 + $0x368] sm:$0xf0] %v2964_v50 }
 0x150   : > { %759 = vst [vmem:[#allocation2 + $0xd8] sm:$0xf0] %v743_v2  ;;  %1392 = vrot.lane.b32.xlu1 %v3228_v1, %s2957_s15  ;;  %1566 = vrot.lane.b32.xlu0 %v3293_v16, %s2960_s9  ;;  %319 = vst [vmem:[#allocation2 + $0x370] sm:$0xf0] %v2964_v50 }
 0x151   : > { %320 = vst [vmem:[#allocation2 + $0x378] sm:$0xf0] %v2964_v50 }
 0x152   : > { %v862_v4 = vpop.permute.xlu1 %861  ;;  %v783_v5 = vpop.permute.xlu0 %782 }
 0x153   : > { %v798_v13 = vsel %vm796_vm8, %v781_v62, %v783_v5  ;;  %v1800_v12 = vld [vmem:[#allocation2 + $0xd0] sm:$0xff] }
 0x154   : > { %814 = vst [vmem:[#allocation2 + $0x108] sm:$0xf] %v798_v13  ;;  %1505 = vrot.lane.b32.xlu1 %v3228_v1, %s2959_s8  ;;  %1449 = vrot.lane.b32.xlu0 %v3235_v3, %s2958_s26  ;;  %v2520_v29 = vpack.c.bf16 %v1800_v12, %v1792_v28  ;;  %v3640_v12 = vld [vmem:[%s3199_s12 + $0x20] sm:$0xff] }
 0x155   : > { %1319 = vst [vmem:[#allocation2 + $0x270] sm:$0xf] %v3640_v12 }
 0x156   : > { %v919_v19 = vpop.permute.xlu1 %918  ;;  %v864_v20 = vpop.permute.xlu0 %863 }
 0x157   : > { %v878_v24 = vsel %vm394_vm1, %v862_v4, %v864_v20  ;;  %v1801_v26 = vld [vmem:[#allocation2 + $0xd8] sm:$0xff] }
 0x158   : > { %894 = vst [vmem:[#allocation2 + $0x148] sm:$0xf] %v878_v24  ;;  %1398 = vrot.lane.b32.xlu1 %v3569_v15, %s2957_s15  ;;  %1562 = vrot.lane.b32.xlu0 %v3235_v3, %s2960_s9  ;;  %v2518_v27 = vpack.c.bf16 %v1801_v26, %v1793_v25 }
 0x15a   : > { %v779_v30 = vpop.permute.xlu1 %778  ;;  %v921_v31 = vpop.permute.xlu0 %920  ;;  %2519 = vmatprep.subr.bf16.mxu1 %v2518_v27 }
 0x15b   : > { %v797_v32 = vsel %vm796_vm8, %v779_v30, %v781_v62  ;;  %v935_v33 = vsel %vm451_vm2, %v919_v19, %v921_v31  ;;  %2521 = vmatpush1.bf16.msra.mxu1 %v2520_v29  ;;  %v1807_v9 = vld [vmem:[#allocation2 + $0x108] sm:$0xff] }
 0x15c   : > { %813 = vst [vmem:[#allocation2 + $0x100] sm:$0xf] %v797_v32  ;;  %951 = vst [vmem:[#allocation2 + $0x148] sm:$0xf0] %v935_v33  ;;  %1455 = vrot.lane.b32.xlu1 %v3248_v6, %s2958_s26  ;;  %1400 = vrot.lane.b32.xlu0 %v3297_v17, %s2957_s15 }
 0x15e   : > { %v917_v8 = vpop.permute.xlu1 %916  ;;  %v860_v10 = vpop.permute.xlu0 %859 }
 0x15f   : > { %v934_v34 = vsel %vm451_vm2, %v917_v8, %v919_v19  ;;  %v877_v35 = vsel %vm394_vm1, %v860_v10, %v862_v4 }
 0x160   : > { %950 = vst [vmem:[#allocation2 + $0x140] sm:$0xf0] %v934_v34  ;;  %893 = vst [vmem:[#allocation2 + $0x140] sm:$0xf] %v877_v35  ;;  %1511 = vrot.lane.b32.xlu1 %v3569_v15, %s2959_s8  ;;  %1457 = vrot.lane.b32.xlu0 %v3305_v18, %s2958_s26 }
 0x162   : > { %v3592_v36 = vpop.permute.xlu1 %786  ;;  %v785_v21 = vpop.permute.xlu0 %784 }
 0x163   : > { %v799_v37 = vsel %vm796_vm8, %v783_v5, %v785_v21  ;;  %v800_v38 = vsel %vm796_vm8, %v785_v21, %v3592_v36  ;;  %v1815_v40 = vld [vmem:[#allocation2 + $0x148] sm:$0xff]  ;;  %v1806_v46 = vld [vmem:[#allocation2 + $0x100] sm:$0xff] }
 0x164   : > { %815 = vst [vmem:[#allocation2 + $0x110] sm:$0xf] %v799_v37  ;;  %816 = vst [vmem:[#allocation2 + $0x118] sm:$0xf] %v800_v38  ;;  %1568 = vrot.lane.b32.xlu1 %v3248_v6, %s2960_s9  ;;  %1513 = vrot.lane.b32.xlu0 %v3297_v17, %s2959_s8  ;;  %v2490_v42 = vpack.c.bf16 %v1815_v40, %v1807_v9  ;;  %v3680_v9 = vcombine.high %v3640_v12, %v3640_v12 }
 0x166   : > { %v3601_v43 = vpop.permute.xlu1 %867  ;;  %v866_v44 = vpop.permute.xlu0 %865  ;;  %2491 = vmatprep.subr.bf16.mxu0 %v2490_v42  ;;  %1320 = vst [vmem:[#allocation2 + $0x278] sm:$0xf] %v3680_v9 }
 0x167   : > { %v879_v45 = vsel %vm394_vm1, %v864_v20, %v866_v44  ;;  %v880_v23 = vsel %vm394_vm1, %v866_v44, %v3601_v43  ;;  %v1814_v48 = vld [vmem:[#allocation2 + $0x140] sm:$0xff] }
 0x168   : > { %895 = vst [vmem:[#allocation2 + $0x150] sm:$0xf] %v879_v45  ;;  %896 = vst [vmem:[#allocation2 + $0x158] sm:$0xf] %v880_v23  ;;  %1620 = vrot.lane.b32.xlu1 %v3252_v7, %s2961_s13  ;;  %1570 = vrot.lane.b32.xlu0 %v3305_v18, %s2960_s9  ;;  %v2492_v49 = vpack.c.bf16 %v1814_v48, %v1806_v46 }
 0x16a   : > { %v3620_v52 = vpop.permute.xlu1 %924  ;;  %v923_v53 = vpop.permute.xlu0 %922  ;;  %2493 = vmatpush1.bf16.msra.mxu0 %v2492_v49  ;;  %v423_v49 = vld [vmem:[%s3199_s12 + $0x20] sm:$0xf] }
 0x16b   : > { %v936_v54 = vsel %vm451_vm2, %v921_v31, %v923_v53  ;;  %v937_v55 = vsel %vm451_vm2, %v923_v53, %v3620_v52  ;;  %v1809_v2 = vld [vmem:[#allocation2 + $0x118] sm:$0xff]  ;;  %v1808_v13 = vld [vmem:[#allocation2 + $0x110] sm:$0xff] }
 0x16c   : > { %952 = vst [vmem:[#allocation2 + $0x150] sm:$0xf0] %v936_v54  ;;  %953 = vst [vmem:[#allocation2 + $0x158] sm:$0xf0] %v937_v55  ;;  %1677 = vrot.lane.b32.xlu1 %v3228_v1, %s2962_s17  ;;  %1622 = vrot.lane.b32.xlu0 %v3248_v6, %s2961_s13 }
 0x16e   : > { %v977_v57 = vpop.permute.xlu1 %976  ;;  %v975_v58 = vpop.permute.xlu0 %974 }
 0x16f   : > { %v991_v60 = vsel %vm509_vm3, %v975_v58, %v977_v57 }
 0x170   : > { %1007 = vst [vmem:[#allocation2 + $0x188] sm:$0xf] %v991_v60  ;;  %1733 = vrot.lane.b32.xlu1 %v3252_v7, %s2963_s2  ;;  %1679 = vrot.lane.b32.xlu0 %v3293_v16, %s2962_s17 }
 0x172   : > { %v1034_v61 = vpop.permute.xlu1 %1033  ;;  %v1032_v62 = vpop.permute.xlu0 %1031 }
 0x173   : > { %v1048_v4 = vsel %vm566_vm4, %v1032_v62, %v1034_v61  ;;  %v1817_v5 = vld [vmem:[#allocation2 + $0x158] sm:$0xff]  ;;  %v1816_v19 = vld [vmem:[#allocation2 + $0x150] sm:$0xff] }
 0x174   : > { %1064 = vst [vmem:[#allocation2 + $0x188] sm:$0xf0] %v1048_v4  ;;  %1618 = vrot.lane.b32.xlu1 %v3228_v1, %s2961_s13  ;;  %1735 = vrot.lane.b32.xlu0 %v3248_v6, %s2963_s2  ;;  %v2522_v20 = vpack.c.bf16 %v1817_v5, %v1809_v2  ;;  %v2524_v7 = vpack.c.bf16 %v1816_v19, %v1808_v13 }
 0x176   : > { %v1090_v16 = vpop.permute.xlu1 %1089  ;;  %v1088_v24 = vpop.permute.xlu0 %1087  ;;  %2523 = vmatprep.subr.bf16.mxu1 %v2522_v20 }
 0x177   : > { %v1104_v25 = vsel %vm624_vm5, %v1088_v24, %v1090_v16  ;;  %2525 = vmatpush1.bf16.msra.mxu1 %v2524_v7 }
 0x178   : > { %1120 = vst [vmem:[#allocation2 + $0x1c8] sm:$0xf] %v1104_v25  ;;  %1731 = vrot.lane.b32.xlu1 %v3228_v1, %s2963_s2  ;;  %1675 = vrot.lane.b32.xlu0 %v3235_v3, %s2962_s17 }
 0x17a   : > { %v1147_v26 = vpop.permute.xlu1 %1146  ;;  %v1145_v27 = vpop.permute.xlu0 %1144 }
 0x17b   : > { %v1161_v28 = vsel %vm681_vm6, %v1145_v27, %v1147_v26  ;;  %v1823_v10 = vld [vmem:[#allocation2 + $0x188] sm:$0xff] }
 0x17c   : > { %1177 = vst [vmem:[#allocation2 + $0x1c8] sm:$0xf0] %v1161_v28  ;;  %1626 = vrot.lane.b32.xlu1 %v3297_v17, %s2961_s13  ;;  %1624 = vrot.lane.b32.xlu0 %v3569_v15, %s2961_s13 }
 0x17e   : > { %v1030_v29 = vpop.permute.xlu1 %1029  ;;  %v973_v30 = vpop.permute.xlu0 %972 }
 0x17f   : > { %v1047_v31 = vsel %vm566_vm4, %v1030_v29, %v1032_v62  ;;  %v990_v1 = vsel %vm509_vm3, %v973_v30, %v975_v58  ;;  %v2740_v58 = vld [vmem:[%s3199_s12 + $0x20] ss:$0 sps:$4 sm:$0xff]  }
 0x180   : > { %1063 = vst [vmem:[#allocation2 + $0x180] sm:$0xf0] %v1047_v31  ;;  %1006 = vst [vmem:[#allocation2 + $0x180] sm:$0xf] %v990_v1  ;;  %1683 = vrot.lane.b32.xlu1 %v3305_v18, %s2962_s17  ;;  %1681 = vrot.lane.b32.xlu0 %v3248_v6, %s2962_s17 }
 0x182   : > { %v1143_v3 = vpop.permute.xlu1 %1142  ;;  %v1086_v32 = vpop.permute.xlu0 %1085 }
 0x183   : > { %v1160_v33 = vsel %vm681_vm6, %v1143_v3, %v1145_v27  ;;  %v1103_v8 = vsel %vm624_vm5, %v1086_v32, %v1088_v24  ;;  %v1831_v34 = vld [vmem:[#allocation2 + $0x1c8] sm:$0xff] }
 0x184   : > { %1176 = vst [vmem:[#allocation2 + $0x1c0] sm:$0xf0] %v1160_v33  ;;  %1119 = vst [vmem:[#allocation2 + $0x1c0] sm:$0xf] %v1103_v8  ;;  %1739 = vrot.lane.b32.xlu1 %v3297_v17, %s2963_s2  ;;  %1737 = vrot.lane.b32.xlu0 %v3569_v15, %s2963_s2  ;;  %v2494_v18 = vpack.c.bf16 %v1831_v34, %v1823_v10  ;;  %v3676_v17 = vcombine.low %v3272_v11, %v3272_v11  ;;  %v2759_v33 = vld [vmem:[%s3199_s12 + $0x10] sm:$0xff] }
 0x185   : > { %v538_v8 = vld [vmem:[%s3199_s12 + $0x20] sm:$0xf] }
 0x186   : > { %v3665_v35 = vpop.permute.xlu1 %980  ;;  %v979_v21 = vpop.permute.xlu0 %978  ;;  %2495 = vmatprep.subr.bf16.mxu0 %v2494_v18 }
 0x187   : > { %v992_v37 = vsel %vm509_vm3, %v977_v57, %v979_v21  ;;  %v993_v38 = vsel %vm509_vm3, %v979_v21, %v3665_v35  ;;  %v1822_v23 = vld [vmem:[#allocation2 + $0x180] sm:$0xff] }
 0x188   : > { %1008 = vst [vmem:[#allocation2 + $0x190] sm:$0xf] %v992_v37  ;;  %1009 = vst [vmem:[#allocation2 + $0x198] sm:$0xf] %v993_v38  ;;  %445 = vrot.lane.b32.xlu1 %v3272_v11, %s2957_s15  ;;  %443 = vrot.lane.b32.xlu0 %v3569_v15, %s2957_s15 }
 0x18a   : > { %v3682_v40 = vpop.permute.xlu1 %1037  ;;  %v1036_v42 = vpop.permute.xlu0 %1035 }
 0x18b   : > { %v1049_v44 = vsel %vm566_vm4, %v1034_v61, %v1036_v42  ;;  %v1050_v45 = vsel %vm566_vm4, %v1036_v42, %v3682_v40  ;;  %v1830_v46 = vld [vmem:[#allocation2 + $0x1c0] sm:$0xff] }
 0x18c   : > { %1065 = vst [vmem:[#allocation2 + $0x190] sm:$0xf0] %v1049_v44  ;;  %1066 = vst [vmem:[#allocation2 + $0x198] sm:$0xf0] %v1050_v45  ;;  %503 = vrot.lane.b32.xlu1 %v3676_v17, %s2958_s26  ;;  %501 = vrot.lane.b32.xlu0 %v3248_v6, %s2958_s26  ;;  %v2496_v48 = vpack.c.bf16 %v1830_v46, %v1822_v23  ;;  %v2742_v42 = vld [vmem:[%s3199_s12 + $0x20] ss:$0 sps:$4 sm:$0xff]  }
 0x18d   : > { %v823_v44 = vld [vmem:[%s3199_s12 + $0x14] sm:$0xff] }
 0x18e   : > { %v3693_v53 = vpop.permute.xlu1 %1093  ;;  %v1092_v54 = vpop.permute.xlu0 %1091  ;;  %2497 = vmatpush1.bf16.msra.mxu0 %v2496_v48  ;;  %v831_v46 = vcombine.low %v823_v44, %v823_v44  ;;  %842 = vst [vmem:[#allocation2 + $0x128] sm:$0xf0] %v823_v44  ;;  %v2747_v44 = vld [vmem:[%s3199_s12 + $0x24] ss:$0 sps:$4 sm:$0xff]  }
 0x18f   : > { %v1105_v55 = vsel %vm624_vm5, %v1090_v16, %v1092_v54  ;;  %v1106_v57 = vsel %vm624_vm5, %v1092_v54, %v3693_v53  ;;  %v653_v54 = vld [vmem:[%s3199_s12 + $0x20] sm:$0xf] }
 0x190   : > { %1121 = vst [vmem:[#allocation2 + $0x1d0] sm:$0xf] %v1105_v55  ;;  %1122 = vst [vmem:[#allocation2 + $0x1d8] sm:$0xf] %v1106_v57  ;;  %449 = vrot.lane.b32.xlu1 %v423_v49, %s2957_s15  ;;  %447 = vrot.lane.b32.xlu0 %v3284_v14, %s2957_s15 }
 0x191   : > { %841 = vst [vmem:[#allocation2 + $0x120] sm:$0xf0] %v831_v46 }
 0x192   : > { %v3702_v60 = vpop.permute.xlu1 %1150  ;;  %v1149_v61 = vpop.permute.xlu0 %1148 }
 0x193   : > { %v1162_v62 = vsel %vm681_vm6, %v1147_v26, %v1149_v61  ;;  %v1163_v2 = vsel %vm681_vm6, %v1149_v61, %v3702_v60  ;;  %v1825_v7 = vld [vmem:[#allocation2 + $0x198] sm:$0xff]  ;;  %v1824_v25 = vld [vmem:[#allocation2 + $0x190] sm:$0xff] }
 0x194   : > { %1178 = vst [vmem:[#allocation2 + $0x1d0] sm:$0xf0] %v1162_v62  ;;  %1179 = vst [vmem:[#allocation2 + $0x1d8] sm:$0xf0] %v1163_v2  ;;  %507 = vrot.lane.b32.xlu1 %v2740_v58, %s2958_s26  ;;  %505 = vrot.lane.b32.xlu0 %v3272_v11, %s2958_s26 }
 0x196   : > { %v1203_v4 = vpop.permute.xlu1 %1202  ;;  %v1201_v5 = vpop.permute.xlu0 %1200 }
 0x197   : > { %v1217_v13 = vsel %vm739_vm7, %v1201_v5, %v1203_v4 }
 0x198   : > { %1233 = vst [vmem:[#allocation2 + $0x208] sm:$0xf] %v1217_v13  ;;  %560 = vrot.lane.b32.xlu1 %v3272_v11, %s2959_s8  ;;  %558 = vrot.lane.b32.xlu0 %v3569_v15, %s2959_s8 }
 0x19a   : > { %v1260_v19 = vpop.permute.xlu1 %1259  ;;  %v1258_v20 = vpop.permute.xlu0 %1257 }
 0x19b   : > { %v1274_v16 = vsel %vm796_vm8, %v1258_v20, %v1260_v19  ;;  %v1833_v24 = vld [vmem:[#allocation2 + $0x1d8] sm:$0xff]  ;;  %v1832_v26 = vld [vmem:[#allocation2 + $0x1d0] sm:$0xff] }
 0x19c   : > { %1290 = vst [vmem:[#allocation2 + $0x208] sm:$0xf0] %v1274_v16  ;;  %618 = vrot.lane.b32.xlu1 %v3676_v17, %s2960_s9  ;;  %616 = vrot.lane.b32.xlu0 %v3248_v6, %s2960_s9  ;;  %v2526_v27 = vpack.c.bf16 %v1833_v24, %v1825_v7  ;;  %v2528_v28 = vpack.c.bf16 %v1832_v26, %v1824_v25 }
 0x19d   : > { %v3767_v25 = vcombine.high %v3404_v22, %v3404_v22 }
 0x19e   : > { %v1341_v29 = vpop.permute.xlu1 %1340  ;;  %v1339_v30 = vpop.permute.xlu0 %1338  ;;  %2527 = vmatprep.subr.bf16.mxu1 %v2526_v27 }
 0x19f   : > { %v1355_v31 = vsel %vm394_vm1, %v1339_v30, %v1341_v29  ;;  %2529 = vmatpush1.bf16.msra.mxu1 %v2528_v28 }
 0x1a0   : > { %1371 = vst [vmem:[#allocation2 + $0x248] sm:$0xf0] %v1355_v31  ;;  %675 = vrot.lane.b32.xlu1 %v3272_v11, %s2961_s13  ;;  %673 = vrot.lane.b32.xlu0 %v3569_v15, %s2961_s13 }
 0x1a2   : > { %v1256_v1 = vpop.permute.xlu1 %1255  ;;  %v1199_v3 = vpop.permute.xlu0 %1198 }
 0x1a3   : > { %v1273_v6 = vsel %vm796_vm8, %v1256_v1, %v1258_v20  ;;  %v1216_v32 = vsel %vm739_vm7, %v1199_v3, %v1201_v5  ;;  %v1839_v37 = vld [vmem:[#allocation2 + $0x208] sm:$0xff] }
 0x1a4   : > { %1289 = vst [vmem:[#allocation2 + $0x200] sm:$0xf0] %v1273_v6  ;;  %1232 = vst [vmem:[#allocation2 + $0x200] sm:$0xf] %v1216_v32  ;;  %733 = vrot.lane.b32.xlu1 %v3676_v17, %s2962_s17  ;;  %731 = vrot.lane.b32.xlu0 %v2759_v33, %s2962_s17  ;;  %v2743_v5 = vld [vmem:[%s3199_s12 + $0x20] ss:$0 sps:$4 sm:$0xff]  }
 0x1a5   : > { %v768_v33 = vld [vmem:[%s3199_s12 + $0x20] sm:$0xf] }
 0x1a6   : > { %v1205_v10 = vpop.permute.xlu1 %1204  ;;  %v1337_v34 = vpop.permute.xlu0 %1336 }
 0x1a7   : > { %v1218_v18 = vsel %vm739_vm7, %v1203_v4, %v1205_v10  ;;  %v1354_v21 = vsel %vm394_vm1, %v1337_v34, %v1339_v30  ;;  %v1847_v38 = vld [vmem:[#allocation2 + $0x248] sm:$0xff] }
 0x1a8   : > { %1234 = vst [vmem:[#allocation2 + $0x210] sm:$0xf] %v1218_v18  ;;  %1370 = vst [vmem:[#allocation2 + $0x240] sm:$0xf0] %v1354_v21  ;;  %564 = vrot.lane.b32.xlu1 %v538_v8, %s2959_s8  ;;  %562 = vrot.lane.b32.xlu0 %v3284_v14, %s2959_s8  ;;  %v2498_v17 = vpack.c.bf16 %v1847_v38, %v1839_v37  ;;  %v3788_v21 = vcombine.high %v3513_v39, %v3513_v39 }
 0x1aa   : > { %v1262_v45 = vpop.permute.xlu1 %1261  ;;  %v3739_v23 = vpop.permute.xlu0 %1206  ;;  %2499 = vmatprep.subr.bf16.mxu0 %v2498_v17 }
 0x1ab   : > { %v1275_v48 = vsel %vm796_vm8, %v1260_v19, %v1262_v45  ;;  %v1219_v49 = vsel %vm739_vm7, %v1205_v10, %v3739_v23  ;;  %v1838_v62 = vld [vmem:[#allocation2 + $0x200] sm:$0xff] }
 0x1ac   : > { %1291 = vst [vmem:[#allocation2 + $0x210] sm:$0xf0] %v1275_v48  ;;  %1235 = vst [vmem:[#allocation2 + $0x218] sm:$0xf] %v1219_v49  ;;  %622 = vrot.lane.b32.xlu1 %v2742_v42, %s2960_s9  ;;  %620 = vrot.lane.b32.xlu0 %v3272_v11, %s2960_s9 }
 0x1ae   : > { %v1343_v55 = vpop.permute.xlu1 %1342  ;;  %v3748_v57 = vpop.permute.xlu0 %1263 }
 0x1af   : > { %v1356_v58 = vsel %vm394_vm1, %v1341_v29, %v1343_v55  ;;  %v1276_v61 = vsel %vm796_vm8, %v1262_v45, %v3748_v57  ;;  %v1846_v2 = vld [vmem:[#allocation2 + $0x240] sm:$0xff] }
 0x1b0   : > { %1372 = vst [vmem:[#allocation2 + $0x250] sm:$0xf0] %v1356_v58  ;;  %1292 = vst [vmem:[#allocation2 + $0x218] sm:$0xf0] %v1276_v61  ;;  %679 = vrot.lane.b32.xlu1 %v653_v54, %s2961_s13  ;;  %677 = vrot.lane.b32.xlu0 %v3284_v14, %s2961_s13  ;;  %v2500_v4 = vpack.c.bf16 %v1846_v2, %v1838_v62 }
 0x1b2   : > { %v1395_v13 = vpop.permute.xlu1 %1394  ;;  %v3757_v19 = vpop.permute.xlu0 %1344  ;;  %2501 = vmatpush1.bf16.msra.mxu0 %v2500_v4 }
 0x1b3   : > { %v1357_v20 = vsel %vm394_vm1, %v1343_v55, %v3757_v19 }
 0x1b4   : > { %1373 = vst [vmem:[#allocation2 + $0x258] sm:$0xf0] %v1357_v20  ;;  %737 = vrot.lane.b32.xlu1 %v2743_v5, %s2962_s17  ;;  %735 = vrot.lane.b32.xlu0 %v3272_v11, %s2962_s17 }
 0x1b6   : > { %v1452_v7 = vpop.permute.xlu1 %1451  ;;  %v1397_v16 = vpop.permute.xlu0 %1396 }
 0x1b7   : > { %v1411_v24 = vsel %vm451_vm2, %v1395_v13, %v1397_v16  ;;  %v1848_v28 = vld [vmem:[#allocation2 + $0x250] sm:$0xff]  ;;  %v1841_v30 = vld [vmem:[#allocation2 + $0x218] sm:$0xff] }
 0x1b8   : > { %1427 = vst [vmem:[#allocation2 + $0x288] sm:$0xf] %v1411_v24  ;;  %790 = vrot.lane.b32.xlu1 %v3272_v11, %s2963_s2  ;;  %788 = vrot.lane.b32.xlu0 %v3569_v15, %s2963_s2  ;;  %v1840_v11 = vld [vmem:[#allocation2 + $0x210] sm:$0xff] }
 0x1b9   : > { %v2532_v3 = vpack.c.bf16 %v1848_v28, %v1840_v11  ;;  %v3822_v24 = vld [vmem:[%s3199_s12 + $0x14] sm:$0xff] }
 0x1ba   : > { %v1508_v26 = vpop.permute.xlu1 %1507  ;;  %v1454_v27 = vpop.permute.xlu0 %1453 }
 0x1bb   : > { %v1468_v29 = vsel %vm509_vm3, %v1452_v7, %v1454_v27  ;;  %v1849_v31 = vld [vmem:[#allocation2 + $0x258] sm:$0xff] }
 0x1bc   : > { %1484 = vst [vmem:[#allocation2 + $0x288] sm:$0xf0] %v1468_v29  ;;  %871 = vrot.lane.b32.xlu1 %v3513_v39, %s2956_s28  ;;  %869 = vrot.lane.b32.xlu0 %v3767_v25, %s2956_s28  ;;  %v2530_v1 = vpack.c.bf16 %v1849_v31, %v1841_v30 }
 0x1be   : > { %v1565_v6 = vpop.permute.xlu1 %1564  ;;  %v1510_v15 = vpop.permute.xlu0 %1509  ;;  %2531 = vmatprep.subr.bf16.mxu1 %v2530_v1 }
 0x1bf   : > { %v1524_v32 = vsel %vm566_vm4, %v1508_v26, %v1510_v15  ;;  %2533 = vmatpush1.bf16.msra.mxu1 %v2532_v3  ;;  %v962_v3 = vld [vmem:[%s3199_s12 + $0x24] sm:$0xf] }
 0x1c0   : > { %1540 = vst [vmem:[#allocation2 + $0x2c8] sm:$0xf] %v1524_v32  ;;  %928 = vrot.lane.b32.xlu1 %v3522_v41, %s2957_s15  ;;  %926 = vrot.lane.b32.xlu0 %v3404_v22, %s2957_s15  ;;  %v849_v22 = vld [vmem:[%s3199_s12 + $0x24] sm:$0xf] }
 0x1c2   : > { %v1393_v8 = vpop.permute.xlu1 %1392  ;;  %v1567_v10 = vpop.permute.xlu0 %1566 }
 0x1c3   : > { %v1410_v34 = vsel %vm451_vm2, %v1393_v8, %v1395_v13  ;;  %v1581_v18 = vsel %vm624_vm5, %v1565_v6, %v1567_v10  ;;  %v1855_v49 = vld [vmem:[#allocation2 + $0x288] sm:$0xff] }
 0x1c4   : > { %1426 = vst [vmem:[#allocation2 + $0x280] sm:$0xf] %v1410_v34  ;;  %1597 = vst [vmem:[#allocation2 + $0x2c8] sm:$0xf0] %v1581_v18  ;;  %794 = vrot.lane.b32.xlu1 %v768_v33, %s2963_s2  ;;  %792 = vrot.lane.b32.xlu0 %v3284_v14, %s2963_s2  ;;  %v2748_v33 = vld [vmem:[%s3199_s12 + $0x24] ss:$0 sps:$4 sm:$0xff]  }
 0x1c6   : > { %v1506_v37 = vpop.permute.xlu1 %1505  ;;  %v1450_v38 = vpop.permute.xlu0 %1449 }
 0x1c7   : > { %v1523_v17 = vsel %vm566_vm4, %v1506_v37, %v1508_v26  ;;  %v1467_v42 = vsel %vm509_vm3, %v1450_v38, %v1452_v7 }
 0x1c8   : > { %1539 = vst [vmem:[#allocation2 + $0x2c0] sm:$0xf] %v1523_v17  ;;  %1483 = vst [vmem:[#allocation2 + $0x280] sm:$0xf0] %v1467_v42  ;;  %875 = vrot.lane.b32.xlu1 %v849_v22, %s2956_s28  ;;  %873 = vrot.lane.b32.xlu0 %v3788_v21, %s2956_s28 }
 0x1ca   : > { %v1399_v45 = vpop.permute.xlu1 %1398  ;;  %v1563_v46 = vpop.permute.xlu0 %1562 }
 0x1cb   : > { %v1412_v48 = vsel %vm451_vm2, %v1397_v16, %v1399_v45  ;;  %v1580_v14 = vsel %vm624_vm5, %v1563_v46, %v1565_v6  ;;  %v1863_v54 = vld [vmem:[#allocation2 + $0x2c8] sm:$0xff] }
 0x1cc   : > { %1428 = vst [vmem:[#allocation2 + $0x290] sm:$0xf] %v1412_v48  ;;  %1596 = vst [vmem:[#allocation2 + $0x2c0] sm:$0xf0] %v1580_v14  ;;  %932 = vrot.lane.b32.xlu1 %v2747_v44, %s2957_s15  ;;  %930 = vrot.lane.b32.xlu0 %v3513_v39, %s2957_s15  ;;  %v2502_v55 = vpack.c.bf16 %v1863_v54, %v1855_v49  ;;  %v1075_v44 = vld [vmem:[%s3199_s12 + $0x24] sm:$0xf] }
 0x1cd   : > { %v2749_v49 = vld [vmem:[%s3199_s12 + $0x24] ss:$0 sps:$4 sm:$0xff]   ;;  %v1299_v54 = vld [vmem:[%s3199_s12 + $0x18] sm:$0xff] }
 0x1ce   : > { %v1456_v58 = vpop.permute.xlu1 %1455  ;;  %v3805_v61 = vpop.permute.xlu0 %1400  ;;  %2503 = vmatprep.subr.bf16.mxu0 %v2502_v55  ;;  %1317 = vst [vmem:[#allocation2 + $0x260] sm:$0xf] %v1299_v54 }
 0x1cf   : > { %v1469_v62 = vsel %vm509_vm3, %v1454_v27, %v1456_v58  ;;  %v1413_v2 = vsel %vm451_vm2, %v1399_v45, %v3805_v61  ;;  %v1854_v7 = vld [vmem:[#allocation2 + $0x280] sm:$0xff] }
 0x1d0   : > { %1485 = vst [vmem:[#allocation2 + $0x290] sm:$0xf0] %v1469_v62  ;;  %1429 = vst [vmem:[#allocation2 + $0x298] sm:$0xf] %v1413_v2  ;;  %984 = vrot.lane.b32.xlu1 %v3513_v39, %s2958_s26  ;;  %982 = vrot.lane.b32.xlu0 %v3767_v25, %s2958_s26  ;;  %v1307_v62 = vcombine.high %v1299_v54, %v1299_v54 }
 0x1d2   : > { %v1512_v4 = vpop.permute.xlu1 %1511  ;;  %v3814_v5 = vpop.permute.xlu0 %1457  ;;  %1318 = vst [vmem:[#allocation2 + $0x268] sm:$0xf] %v1307_v62  ;;  %v2752_v62 = vld [vmem:[%s3199_s12 + $0x28] ss:$0 sps:$4 sm:$0xff]  }
 0x1d3   : > { %v1525_v13 = vsel %vm566_vm4, %v1510_v15, %v1512_v4  ;;  %v1470_v20 = vsel %vm509_vm3, %v1456_v58, %v3814_v5  ;;  %v1862_v16 = vld [vmem:[#allocation2 + $0x2c0] sm:$0xff] }
 0x1d4   : > { %1541 = vst [vmem:[#allocation2 + $0x2d0] sm:$0xf] %v1525_v13  ;;  %1486 = vst [vmem:[#allocation2 + $0x298] sm:$0xf0] %v1470_v20  ;;  %1041 = vrot.lane.b32.xlu1 %v3522_v41, %s2959_s8  ;;  %1039 = vrot.lane.b32.xlu0 %v3822_v24, %s2959_s8  ;;  %v2504_v26 = vpack.c.bf16 %v1862_v16, %v1854_v7 }
 0x1d6   : > { %v1569_v27 = vpop.permute.xlu1 %1568  ;;  %v3826_v28 = vpop.permute.xlu0 %1513  ;;  %2505 = vmatpush1.bf16.msra.mxu0 %v2504_v26 }
 0x1d7   : > { %v1582_v29 = vsel %vm624_vm5, %v1567_v10, %v1569_v27  ;;  %v1526_v30 = vsel %vm566_vm4, %v1512_v4, %v3826_v28  ;;  %v1856_v17 = vld [vmem:[#allocation2 + $0x290] sm:$0xff] }
 0x1d8   : > { %1598 = vst [vmem:[#allocation2 + $0x2d0] sm:$0xf0] %v1582_v29  ;;  %1542 = vst [vmem:[#allocation2 + $0x2d8] sm:$0xf] %v1526_v30  ;;  %1097 = vrot.lane.b32.xlu1 %v3513_v39, %s2960_s9  ;;  %1095 = vrot.lane.b32.xlu0 %v3767_v25, %s2960_s9 }
 0x1da   : > { %v1621_v31 = vpop.permute.xlu1 %1620  ;;  %v3835_v1 = vpop.permute.xlu0 %1570 }
 0x1db   : > { %v1583_v11 = vsel %vm624_vm5, %v1569_v27, %v3835_v1  ;;  %v1857_v22 = vld [vmem:[#allocation2 + $0x298] sm:$0xff] }
 0x1dc   : > { %1599 = vst [vmem:[#allocation2 + $0x2d8] sm:$0xf0] %v1583_v11  ;;  %1154 = vrot.lane.b32.xlu1 %v3522_v41, %s2961_s13  ;;  %1152 = vrot.lane.b32.xlu0 %v3822_v24, %s2961_s13 }
 0x1de   : > { %v1678_v6 = vpop.permute.xlu1 %1677  ;;  %v1623_v15 = vpop.permute.xlu0 %1622 }
 0x1df   : > { %v1637_v32 = vsel %vm681_vm6, %v1621_v31, %v1623_v15  ;;  %v1864_v34 = vld [vmem:[#allocation2 + $0x2d0] sm:$0xff] }
 0x1e0   : > { %1653 = vst [vmem:[#allocation2 + $0x308] sm:$0xf] %v1637_v32  ;;  %988 = vrot.lane.b32.xlu1 %v962_v3, %s2958_s26  ;;  %986 = vrot.lane.b32.xlu0 %v3788_v21, %s2958_s26  ;;  %v2536_v42 = vpack.c.bf16 %v1864_v34, %v1856_v17  ;;  %v3886_v32 = vcombine.low %v3640_v12, %v3640_v12 }
 0x1e2   : > { %v1734_v8 = vpop.permute.xlu1 %1733  ;;  %v1680_v10 = vpop.permute.xlu0 %1679 }
 0x1e3   : > { %v1694_v18 = vsel %vm739_vm7, %v1678_v6, %v1680_v10  ;;  %v1865_v37 = vld [vmem:[#allocation2 + $0x2d8] sm:$0xff] }
 0x1e4   : > { %1710 = vst [vmem:[#allocation2 + $0x308] sm:$0xf0] %v1694_v18  ;;  %1045 = vrot.lane.b32.xlu1 %v2748_v33, %s2959_s8  ;;  %1043 = vrot.lane.b32.xlu0 %v3513_v39, %s2959_s8  ;;  %v2534_v38 = vpack.c.bf16 %v1865_v37, %v1857_v22  ;;  %v2965_v18 = vmov 0.0|0.0  }
 0x1e6   : > { %v1619_v45 = vpop.permute.xlu1 %1618  ;;  %v1736_v46 = vpop.permute.xlu0 %1735  ;;  %2535 = vmatprep.subr.bf16.mxu1 %v2534_v38  ;;  %v3903_v38 = vld [vmem:[#allocation6] sm:$0xff] }
 0x1e7   : > { %v1636_v48 = vsel %vm681_vm6, %v1619_v45, %v1621_v31  ;;  %v1750_v14 = vsel %vm796_vm8, %v1734_v8, %v1736_v46  ;;  %2537 = vmatpush1.bf16.msra.mxu1 %v2536_v42 }
 0x1e8   : > { %1652 = vst [vmem:[#allocation2 + $0x300] sm:$0xf] %v1636_v48  ;;  %1766 = vst [vmem:[#allocation2 + $0x348] sm:$0xf] %v1750_v14  ;;  %1101 = vrot.lane.b32.xlu1 %v1075_v44, %s2960_s9  ;;  %1099 = vrot.lane.b32.xlu0 %v3788_v21, %s2960_s9  ;;  %v2751_v44 = vld [vmem:[%s3199_s12 + $0x24] ss:$0 sps:$4 sm:$0xff]  }
 0x1ea   : > { %v1732_v55 = vpop.permute.xlu1 %1731  ;;  %v1676_v58 = vpop.permute.xlu0 %1675 }
 0x1eb   : > { %v1749_v2 = vsel %vm796_vm8, %v1732_v55, %v1734_v8  ;;  %v1693_v4 = vsel %vm739_vm7, %v1676_v58, %v1678_v6  ;;  %v1871_v26 = vld [vmem:[#allocation2 + $0x308] sm:$0xff] }
 0x1ec   : > { %1765 = vst [vmem:[#allocation2 + $0x340] sm:$0xf] %v1749_v2  ;;  %1709 = vst [vmem:[#allocation2 + $0x300] sm:$0xf0] %v1693_v4  ;;  %1158 = vrot.lane.b32.xlu1 %v2749_v49, %s2961_s13  ;;  %1156 = vrot.lane.b32.xlu0 %v3513_v39, %s2961_s13 }
 0x1ee   : > { %v3866_v13 = vpop.permute.xlu1 %1626  ;;  %v1625_v20 = vpop.permute.xlu0 %1624 }
 0x1ef   : > { %v1638_v7 = vsel %vm681_vm6, %v1623_v15, %v1625_v20  ;;  %v1639_v16 = vsel %vm681_vm6, %v1625_v20, %v3866_v13  ;;  %v1879_v27 = vld [vmem:[#allocation2 + $0x348] sm:$0xff] }
 0x1f0   : > { %1654 = vst [vmem:[#allocation2 + $0x310] sm:$0xf] %v1638_v7  ;;  %1655 = vst [vmem:[#allocation2 + $0x318] sm:$0xf] %v1639_v16  ;;  %1210 = vrot.lane.b32.xlu1 %v3513_v39, %s2962_s17  ;;  %1208 = vrot.lane.b32.xlu0 %v3767_v25, %s2962_s17  ;;  %v2506_v29 = vpack.c.bf16 %v1879_v27, %v1871_v26  ;;  %v1778_v26 = vld [vmem:[#allocation2 + $0x20] sm:$0xff] }
 0x1f2   : > { %v3875_v30 = vpop.permute.xlu1 %1683  ;;  %v1682_v31 = vpop.permute.xlu0 %1681  ;;  %2507 = vmatprep.subr.bf16.mxu0 %v2506_v29 }
 0x1f3   : > { %v1695_v11 = vsel %vm739_vm7, %v1680_v10, %v1682_v31  ;;  %v1696_v3 = vsel %vm739_vm7, %v1682_v31, %v3875_v30  ;;  %v1870_v6 = vld [vmem:[#allocation2 + $0x300] sm:$0xff]  ;;  %v1779_v31 = vld [vmem:[#allocation2 + $0x28] sm:$0xff] }
 0x1f4   : > { %v1878_v15 = vld [vmem:[#allocation2 + $0x340] sm:$0xff]  ;;  %1711 = vst [vmem:[#allocation2 + $0x310] sm:$0xf0] %v1695_v11  ;;  %1712 = vst [vmem:[#allocation2 + $0x318] sm:$0xf0] %v1696_v3  ;;  %1267 = vrot.lane.b32.xlu1 %v3522_v41, %s2963_s2  ;;  %1265 = vrot.lane.b32.xlu0 %v3822_v24, %s2963_s2 }
 0x1f5   : > { %v2508_v25 = vpack.c.bf16 %v1878_v15, %v1870_v6  ;;  %v3897_v41 = vld [vmem:[%s3199_s12 + $0x18] sm:$0xff]  ;;  %v1188_v24 = vld [vmem:[%s3199_s12 + $0x24] sm:$0xf] }
 0x1f6   : > { %v3888_v33 = vpop.permute.xlu1 %1739  ;;  %v1738_v8 = vpop.permute.xlu0 %1737  ;;  %v3925_v7 = vcombine.high %v3897_v41, %v3897_v41 }
 0x1f7   : > { %2509 = vmatpush1.bf16.msra.mxu0 %v2508_v25  ;;  %v1751_v10 = vsel %vm796_vm8, %v1736_v46, %v1738_v8  ;;  %v1752_v34 = vsel %vm796_vm8, %v1738_v8, %v3888_v33 }
 0x1f8   : > { %2511 = vmatprep.subr.bf16.mxu0 %v2965_v18  ;;  %1767 = vst [vmem:[#allocation2 + $0x350] sm:$0xf] %v1751_v10  ;;  %1768 = vst [vmem:[#allocation2 + $0x358] sm:$0xf] %v1752_v34  ;;  %1348 = vrot.lane.b32.xlu1 %v3886_v32, %s2956_s28 }
 0x1f9   : > { %1346 = vrot.lane.b32.xlu0 %v3897_v41, %s2956_s28 }
 0x1fa   : > { %v446_v22 = vpop.permute.xlu1 %445  ;;  %v444_v37 = vpop.permute.xlu0 %443 }
 0x1fb   : > { %2513 = vmatpush1.bf16.msra.mxu0 %v2965_v18  ;;  %v456_v17 = vsel %vm451_vm2, %v3472_v56, %v444_v37  ;;  %v457_v42 = vsel %vm451_vm2, %v444_v37, %v446_v22  ;;  %v1873_v48 = vld [vmem:[#allocation2 + $0x318] sm:$0xff]  ;;  %v1872_v54 = vld [vmem:[#allocation2 + $0x310] sm:$0xff] }
 0x1fc   : > { %472 = vst [vmem:[#allocation2 + $0x60] sm:$0xf] %v456_v17  ;;  %473 = vst [vmem:[#allocation2 + $0x68] sm:$0xf] %v457_v42  ;;  %1214 = vrot.lane.b32.xlu1 %v1188_v24, %s2962_s17  ;;  %v1780_v37 = vld [vmem:[#allocation2 + $0x30] sm:$0xff]  ;;  %v1781_v42 = vld [vmem:[#allocation2 + $0x38] sm:$0xff] }
 0x1fd   : > { %1212 = vrot.lane.b32.xlu0 %v3788_v21, %s2962_s17 }
 0x1fe   : > { %1967 = vmatmul.mubr.f32.vlgmr.msra.gmra.mrb[0].mxu0 %v3903_v38  ;;  %v504_v45 = vpop.permute.xlu1 %503  ;;  %v502_v46 = vpop.permute.xlu0 %501 }
 0x1ff   : > { %2108 = vmatprep.mubr.f32.mxu0 %v2964_v50  ;;  %v514_v56 = vsel %vm509_vm3, %v3481_v63, %v502_v46  ;;  %v515_v14 = vsel %vm509_vm3, %v502_v46, %v504_v45  ;;  %v1881_v49 = vld [vmem:[#allocation2 + $0x358] sm:$0xff]  ;;  %v1880_v55 = vld [vmem:[#allocation2 + $0x350] sm:$0xff] }
 0x200   : > { %530 = vst [vmem:[#allocation2 + $0x60] sm:$0xf0] %v514_v56  ;;  %531 = vst [vmem:[#allocation2 + $0x68] sm:$0xf0] %v515_v14  ;;  %1271 = vrot.lane.b32.xlu1 %v2751_v44, %s2963_s2  ;;  %v2538_v21 = vpack.c.bf16 %v1881_v49, %v1873_v48  ;;  %v2540_v58 = vpack.c.bf16 %v1880_v55, %v1872_v54  ;;  %v1382_v49 = vld [vmem:[%s3199_s12 + $0x28] sm:$0xf] }
 0x201   : > { %1269 = vrot.lane.b32.xlu0 %v3513_v39, %s2963_s2 }
 0x202   : > { %v450_v2 = vpop.permute.xlu1 %449  ;;  %v448_v4 = vpop.permute.xlu0 %447  ;;  %2539 = vmatprep.subr.bf16.mxu1 %v2538_v21 }
 0x203   : > { %v458_v63 = vsel %vm451_vm2, %v446_v22, %v448_v4  ;;  %v459_v20 = vsel %vm451_vm2, %v448_v4, %v450_v2  ;;  %2541 = vmatpush1.bf16.msra.mxu1 %v2540_v58  ;;  %v2754_v58 = vld [vmem:[%s3199_s12 + $0x28] ss:$0 sps:$4 sm:$0xff]  }
 0x204   : > { %474 = vst [vmem:[#allocation2 + $0x70] sm:$0xf] %v458_v63  ;;  %475 = vst [vmem:[#allocation2 + $0x78] sm:$0xf] %v459_v20  ;;  %1352 = vrot.lane.b32.xlu1 %v2752_v62, %s2956_s28  ;;  %2543 = vmatprep.subr.bf16.mxu1 %v2965_v18 }
 0x205   : > { %1350 = vrot.lane.b32.xlu0 %v3640_v12, %s2956_s28 }
 0x206   : > { %v508_v39 = vpop.permute.xlu1 %507  ;;  %v506_v16 = vpop.permute.xlu0 %505 }
 0x207   : > { %v516_v27 = vsel %vm509_vm3, %v504_v45, %v506_v16  ;;  %v517_v29 = vsel %vm509_vm3, %v506_v16, %v508_v39  ;;  %v1787_v11 = vld [vmem:[#allocation2 + $0x68] sm:$0xff]  ;;  %v1786_v3 = vld [vmem:[#allocation2 + $0x60] sm:$0xff]  ;;  %2545 = vmatpush1.bf16.msra.mxu1 %v2965_v18 }
 0x208   : > { %532 = vst [vmem:[#allocation2 + $0x70] sm:$0xf0] %v516_v27  ;;  %533 = vst [vmem:[#allocation2 + $0x78] sm:$0xf0] %v517_v29  ;;  %1404 = vrot.lane.b32.xlu1 %v3640_v12, %s2957_s15  ;;  %v2546_v6 = vpack.c.bf16 %v1787_v11, %v1779_v31  ;;  %v2548_v15 = vpack.c.bf16 %v1786_v3, %v1778_v26 }
 0x209   : > { %1402 = vrot.lane.b32.xlu0 %v3925_v7, %s2957_s15 }
 0x20a   : > { %v561_v25 = vpop.permute.xlu1 %560  ;;  %v559_v8 = vpop.permute.xlu0 %558  ;;  %2547 = vmatprep.subr.bf16.mxu0 %v2546_v6  ;;  %2038 = vmatmul.mubr.f32.vlgmr.msra.gmra.mrb[0].mxu1 %v3903_v38 }
 0x20b   : > { %v571_v10 = vsel %vm566_vm4, %v3531_v47, %v559_v8  ;;  %v572_v34 = vsel %vm566_vm4, %v559_v8, %v561_v25  ;;  %2549 = vmatpush1.bf16.msra.mxu0 %v2548_v15  ;;  %2179 = vmatprep.mubr.f32.mxu1 %v2964_v50  ;;  %v2755_v15 = vld [vmem:[%s3199_s12 + $0x28] ss:$0 sps:$4 sm:$0xff]  }
 0x20c   : > { %587 = vst [vmem:[#allocation2 + $0xa0] sm:$0xf] %v571_v10  ;;  %588 = vst [vmem:[#allocation2 + $0xa8] sm:$0xf] %v572_v34  ;;  %1461 = vrot.lane.b32.xlu1 %v3886_v32, %s2958_s26 }
 0x20d   : > { %1459 = vrot.lane.b32.xlu0 %v3897_v41, %s2958_s26 }
 0x20e   : > { %v619_v24 = vpop.permute.xlu1 %618  ;;  %v617_v22 = vpop.permute.xlu0 %616 }
 0x20f   : > { %v629_v17 = vsel %vm624_vm5, %v3540_v51, %v617_v22  ;;  %v630_v47 = vsel %vm624_vm5, %v617_v22, %v619_v24  ;;  %v1789_v44 = vld [vmem:[#allocation2 + $0x78] sm:$0xff]  ;;  %v1788_v45 = vld [vmem:[#allocation2 + $0x70] sm:$0xff] }
 0x210   : > { %645 = vst [vmem:[#allocation2 + $0xa0] sm:$0xf0] %v629_v17  ;;  %646 = vst [vmem:[#allocation2 + $0xa8] sm:$0xf0] %v630_v47  ;;  %1517 = vrot.lane.b32.xlu1 %v3640_v12, %s2959_s8  ;;  %v2578_v50 = vpack.c.bf16 %v1789_v44, %v1781_v42  ;;  %v2580_v46 = vpack.c.bf16 %v1788_v45, %v1780_v37 }
 0x211   : > { %1515 = vrot.lane.b32.xlu0 %v3925_v7, %s2959_s8 }
 0x212   : > { %v676_v48 = vpop.permute.xlu1 %675  ;;  %v674_v56 = vpop.permute.xlu0 %673  ;;  %2579 = vmatprep.subr.bf16.mxu1 %v2578_v50 }
 0x213   : > { %v686_v51 = vsel %vm681_vm6, %v3549_v59, %v674_v56  ;;  %v687_v14 = vsel %vm681_vm6, %v674_v56, %v676_v48  ;;  %2581 = vmatpush1.bf16.msra.mxu1 %v2580_v46 }
 0x214   : > { %702 = vst [vmem:[#allocation2 + $0xe0] sm:$0xf] %v686_v51  ;;  %703 = vst [vmem:[#allocation2 + $0xe8] sm:$0xf] %v687_v14  ;;  %1574 = vrot.lane.b32.xlu1 %v3886_v32, %s2960_s9 }
 0x215   : > { %1572 = vrot.lane.b32.xlu0 %v3897_v41, %s2960_s9 }
 0x216   : > { %v734_v54 = vpop.permute.xlu1 %733  ;;  %v732_v55 = vpop.permute.xlu0 %731 }
 0x217   : > { %v744_v21 = vsel %vm739_vm7, %v3558_v0, %v732_v55  ;;  %v745_v59 = vsel %vm739_vm7, %v732_v55, %v734_v54  ;;  %v1495_v0 = vld [vmem:[%s3199_s12 + $0x28] sm:$0xf]  ;;  %v1794_v31 = vld [vmem:[#allocation2 + $0xa0] sm:$0xff] }
 0x218   : > { %760 = vst [vmem:[#allocation2 + $0xe0] sm:$0xf0] %v744_v21  ;;  %761 = vst [vmem:[#allocation2 + $0xe8] sm:$0xf0] %v745_v59  ;;  %1408 = vrot.lane.b32.xlu1 %v1382_v49, %s2957_s15  ;;  %v1795_v16 = vld [vmem:[#allocation2 + $0xa8] sm:$0xff] }
 0x219   : > { %1406 = vrot.lane.b32.xlu0 %v3680_v9, %s2957_s15  ;;  %s2278_s15 = scalar_lea.sflag [#allocation5], %s3195_s10 }
 0x21a   : > { %v565_v62 = vpop.permute.xlu1 %564  ;;  %v563_v2 = vpop.permute.xlu0 %562 }
 0x21b   : > { %v573_v4 = vsel %vm566_vm4, %v561_v25, %v563_v2  ;;  %v574_v63 = vsel %vm566_vm4, %v563_v2, %v565_v62 }
 0x21c   : > { %589 = vst [vmem:[#allocation2 + $0xb0] sm:$0xf] %v573_v4  ;;  %590 = vst [vmem:[#allocation2 + $0xb8] sm:$0xf] %v574_v63  ;;  %1465 = vrot.lane.b32.xlu1 %v2754_v58, %s2958_s26 }
 0x21d   : > { %1463 = vrot.lane.b32.xlu0 %v3640_v12, %s2958_s26  ;;  %s2848_s26 = scalar_lea.vmem %s2303_s1, 1024 }
 0x21e   : > { %v623_v20 = vpop.permute.xlu1 %622  ;;  %v621_v39 = vpop.permute.xlu0 %620  ;;  %p2849_p2 = scmp.ne.s32.totalorder %s2303_s1, %s2848_s26 }
 0x21f   : > { %v631_v26 = vsel %vm624_vm5, %v619_v24, %v621_v39  ;;  %v632_v27 = vsel %vm624_vm5, %v621_v39, %v623_v20  ;;  %v1803_v29 = vld [vmem:[#allocation2 + $0xe8] sm:$0xff]  ;;  %v1802_v11 = vld [vmem:[#allocation2 + $0xe0] sm:$0xff] }
 0x220   : > { %647 = vst [vmem:[#allocation2 + $0xb0] sm:$0xf0] %v631_v26  ;;  %648 = vst [vmem:[#allocation2 + $0xb8] sm:$0xf0] %v632_v27  ;;  %1521 = vrot.lane.b32.xlu1 %v1495_v0, %s2959_s8  ;;  %v2550_v3 = vpack.c.bf16 %v1803_v29, %v1795_v16  ;;  %v2552_v6 = vpack.c.bf16 %v1802_v11, %v1794_v31  ;;  %p2850_p8 = pnand %p2849_p2, %p3139_p6 }
 0x221   : > { %1519 = vrot.lane.b32.xlu0 %v3680_v9, %s2959_s8  ;;  %s2966_s8 = smov [#allocation9]  }
 0x222   : > { %v680_v25 = vpop.permute.xlu1 %679  ;;  %v678_v8 = vpop.permute.xlu0 %677  ;;  %2551 = vmatprep.subr.bf16.mxu0 %v2550_v3  ;;  %p2851_p13 = pneg %p2850_p8 }
 0x223   : > { %v688_v10 = vsel %vm681_vm6, %v676_v48, %v678_v8  ;;  %v689_v34 = vsel %vm681_vm6, %v678_v8, %v680_v25  ;;  %2553 = vmatpush1.bf16.msra.mxu0 %v2552_v6 }
 0x224   : > { %704 = vst [vmem:[#allocation2 + $0xf0] sm:$0xf] %v688_v10  ;;  %705 = vst [vmem:[#allocation2 + $0xf8] sm:$0xf] %v689_v34  ;;  %1578 = vrot.lane.b32.xlu1 %v2755_v15, %s2960_s9 }
 0x225   : > { %1576 = vrot.lane.b32.xlu0 %v3640_v12, %s2960_s9  ;;  %s2852_s9 = sshll.u32 %s2966_s8, 4  ;;  %s2853_s9 = int_to_ptr.vmem [resolvable:$false] %s2852_s9 }
 0x226   : > { %v738_v24 = vpop.permute.xlu1 %737  ;;  %v736_v22 = vpop.permute.xlu0 %735  ;;  %p2855_p3 = scmp.lt.s32.totalorder %s2303_s1, %s2853_s9 }
 0x227   : > { %v746_v37 = vsel %vm739_vm7, %v734_v54, %v736_v22  ;;  %v747_v17 = vsel %vm739_vm7, %v736_v22, %v738_v24  ;;  %v1797_v48 = vld [vmem:[#allocation2 + $0xb8] sm:$0xff]  ;;  %v1796_v14 = vld [vmem:[#allocation2 + $0xb0] sm:$0xff] }
 0x228   : > { %762 = vst [vmem:[#allocation2 + $0xf0] sm:$0xf0] %v746_v37  ;;  %763 = vst [vmem:[#allocation2 + $0xf8] sm:$0xf0] %v747_v17  ;;  %1630 = vrot.lane.b32.xlu1 %v3640_v12, %s2961_s13  ;;  %v1608_v54 = vld [vmem:[%s3199_s12 + $0x28] sm:$0xf] }
 0x229   : > { %1628 = vrot.lane.b32.xlu0 %v3925_v7, %s2961_s13 }
 0x22a   : > { %v791_v47 = vpop.permute.xlu1 %790  ;;  %v789_v42 = vpop.permute.xlu0 %788 }
 0x22b   : > { %v801_v44 = vsel %vm796_vm8, %v3592_v36, %v789_v42  ;;  %v802_v45 = vsel %vm796_vm8, %v789_v42, %v791_v47 }
 0x22c   : > { %817 = vst [vmem:[#allocation2 + $0x120] sm:$0xf] %v801_v44  ;;  %818 = vst [vmem:[#allocation2 + $0x128] sm:$0xf] %v802_v45  ;;  %1687 = vrot.lane.b32.xlu1 %v3886_v32, %s2962_s17 }
 0x22d   : > { %1685 = vrot.lane.b32.xlu0 %v3897_v41, %s2962_s17 }
 0x22e   : > { %v872_v50 = vpop.permute.xlu1 %871  ;;  %v870_v46 = vpop.permute.xlu0 %869 }
 0x22f   : > { %v881_v56 = vsel %vm394_vm1, %v3601_v43, %v870_v46  ;;  %v882_v51 = vsel %vm394_vm1, %v870_v46, %v872_v50  ;;  %v1805_v36 = vld [vmem:[#allocation2 + $0xf8] sm:$0xff]  ;;  %v1804_v49 = vld [vmem:[#allocation2 + $0xf0] sm:$0xff] }
 0x230   : > { %897 = vst [vmem:[#allocation2 + $0x160] sm:$0xf] %v881_v56  ;;  %898 = vst [vmem:[#allocation2 + $0x168] sm:$0xf] %v882_v51  ;;  %1743 = vrot.lane.b32.xlu1 %v3640_v12, %s2963_s2  ;;  %v2582_v32 = vpack.c.bf16 %v1805_v36, %v1797_v48  ;;  %v2584_v41 = vpack.c.bf16 %v1804_v49, %v1796_v14 }
 0x231   : > { %1741 = vrot.lane.b32.xlu0 %v3925_v7, %s2963_s2  ;;  %v2756_v7 = vld [vmem:[%s3199_s12 + $0x28] ss:$0 sps:$4 sm:$0xff]  }
 0x232   : > { %v929_v55 = vpop.permute.xlu1 %928  ;;  %v927_v21 = vpop.permute.xlu0 %926  ;;  %2583 = vmatprep.subr.bf16.mxu1 %v2582_v32 }
 0x233   : > { %v938_v43 = vsel %vm451_vm2, %v3620_v52, %v927_v21  ;;  %v939_v59 = vsel %vm451_vm2, %v927_v21, %v929_v55  ;;  %2585 = vmatpush1.bf16.msra.mxu1 %v2584_v41  ;;  %v1721_v52 = vld [vmem:[%s3199_s12 + $0x28] sm:$0xf]  ;;  %v1810_v27 = vld [vmem:[#allocation2 + $0x120] sm:$0xff]  ;;  %s2477_s12 = sshll.u32 %s2934_s21, 3  ;;  %s2854_s21 = scalar_lea.vmem %s2853_s9, 2048 }
 0x234   : > { %954 = vst [vmem:[#allocation2 + $0x160] sm:$0xf0] %v938_v43  ;;  %955 = vst [vmem:[#allocation2 + $0x168] sm:$0xf0] %v939_v59  ;;  %1634 = vrot.lane.b32.xlu1 %v1608_v54, %s2961_s13  ;;  %v1811_v20 = vld [vmem:[#allocation2 + $0x128] sm:$0xff]  ;;  %s2298_s29 = sadd.s32 %s2478_s7, %s2477_s12  ;;  %p2856_p7 = scmp.lt.s32.totalorder %s2854_s21, %s2848_s26 }
 0x235   : > { %1632 = vrot.lane.b32.xlu0 %v3680_v9, %s2961_s13  ;;  %s2479_s16 = sshll.u32 %s2298_s29, 7 }
 0x236   : > { %v795_v58 = vpop.permute.xlu1 %794  ;;  %v793_v62 = vpop.permute.xlu0 %792  ;;  %s4117_s28 = scalar_lea.hbm %s4172_s3, %s2479_s16  ;;  %p2857_p12 = por %p2856_p7, %p2855_p3 }
 0x237   : > { %v803_v2 = vsel %vm796_vm8, %v791_v47, %v793_v62  ;;  %v804_v4 = vsel %vm796_vm8, %v793_v62, %v795_v58 }
 0x238   : > { %819 = vst [vmem:[#allocation2 + $0x130] sm:$0xf] %v803_v2  ;;  %820 = vst [vmem:[#allocation2 + $0x138] sm:$0xf] %v804_v4  ;;  %1691 = vrot.lane.b32.xlu1 %v2756_v7, %s2962_s17  ;;  %p2858_p11 = pnand %p2857_p12, %p2851_p13 }
 0x239   : > { %1689 = vrot.lane.b32.xlu0 %v3640_v12, %s2962_s17 }
 0x23a   : > { %v876_v63 = vpop.permute.xlu1 %875  ;;  %v874_v0 = vpop.permute.xlu0 %873 }
 0x23b   : > { %v883_v39 = vsel %vm394_vm1, %v872_v50, %v874_v0  ;;  %v884_v16 = vsel %vm394_vm1, %v874_v0, %v876_v63  ;;  %v1819_v26 = vld [vmem:[#allocation2 + $0x168] sm:$0xff]  ;;  %v1818_v29 = vld [vmem:[#allocation2 + $0x160] sm:$0xff] }
 0x23c   : > { %899 = vst [vmem:[#allocation2 + $0x170] sm:$0xf] %v883_v39  ;;  %900 = vst [vmem:[#allocation2 + $0x178] sm:$0xf] %v884_v16  ;;  %1747 = vrot.lane.b32.xlu1 %v1721_v52, %s2963_s2  ;;  %v2554_v31 = vpack.c.bf16 %v1819_v26, %v1811_v20  ;;  %v2556_v12 = vpack.c.bf16 %v1818_v29, %v1810_v27 }
 0x23d   : > { %1745 = vrot.lane.b32.xlu0 %v3680_v9, %s2963_s2 }
 0x23e   : > { %v933_v11 = vpop.permute.xlu1 %932  ;;  %v931_v3 = vpop.permute.xlu0 %930  ;;  %2555 = vmatprep.subr.bf16.mxu0 %v2554_v31 }
 0x23f   : > { %v940_v6 = vsel %vm451_vm2, %v929_v55, %v931_v3  ;;  %v941_v15 = vsel %vm451_vm2, %v931_v3, %v933_v11  ;;  %2557 = vmatpush1.bf16.msra.mxu0 %v2556_v12  ;;  %v1813_v22 = vld [vmem:[#allocation2 + $0x138] sm:$0xff]  ;;  %v1812_v42 = vld [vmem:[#allocation2 + $0x130] sm:$0xff] }
 0x240   : > { %956 = vst [vmem:[#allocation2 + $0x170] sm:$0xf0] %v940_v6  ;;  %957 = vst [vmem:[#allocation2 + $0x178] sm:$0xf0] %v941_v15 }
 0x242   : > { %v985_v25 = vpop.permute.xlu1 %984  ;;  %v983_v8 = vpop.permute.xlu0 %982 }
 0x243   : > { %v994_v10 = vsel %vm509_vm3, %v3665_v35, %v983_v8  ;;  %v995_v34 = vsel %vm509_vm3, %v983_v8, %v985_v25 }
 0x244   : > { %1010 = vst [vmem:[#allocation2 + $0x1a0] sm:$0xf] %v994_v10  ;;  %1011 = vst [vmem:[#allocation2 + $0x1a8] sm:$0xf] %v995_v34 }
 0x246   : > { %v1042_v9 = vpop.permute.xlu1 %1041  ;;  %v1040_v24 = vpop.permute.xlu0 %1039 }
 0x247   : > { %v1051_v37 = vsel %vm566_vm4, %v3682_v40, %v1040_v24  ;;  %v1052_v17 = vsel %vm566_vm4, %v1040_v24, %v1042_v9  ;;  %v1821_v47 = vld [vmem:[#allocation2 + $0x178] sm:$0xff]  ;;  %v1820_v44 = vld [vmem:[#allocation2 + $0x170] sm:$0xff] }
 0x248   : > { %1067 = vst [vmem:[#allocation2 + $0x1a0] sm:$0xf0] %v1051_v37  ;;  %1068 = vst [vmem:[#allocation2 + $0x1a8] sm:$0xf0] %v1052_v17  ;;  %v2586_v45 = vpack.c.bf16 %v1821_v47, %v1813_v22  ;;  %v2588_v50 = vpack.c.bf16 %v1820_v44, %v1812_v42 }
 0x24a   : > { %v1098_v35 = vpop.permute.xlu1 %1097  ;;  %v1096_v46 = vpop.permute.xlu0 %1095  ;;  %2587 = vmatprep.subr.bf16.mxu1 %v2586_v45 }
 0x24b   : > { %v1107_v48 = vsel %vm624_vm5, %v3693_v53, %v1096_v46  ;;  %v1108_v56 = vsel %vm624_vm5, %v1096_v46, %v1098_v35  ;;  %2589 = vmatpush1.bf16.msra.mxu1 %v2588_v50 }
 0x24c   : > { %1123 = vst [vmem:[#allocation2 + $0x1e0] sm:$0xf] %v1107_v48  ;;  %1124 = vst [vmem:[#allocation2 + $0x1e8] sm:$0xf] %v1108_v56 }
 0x24e   : > { %v1155_v40 = vpop.permute.xlu1 %1154  ;;  %v1153_v51 = vpop.permute.xlu0 %1152 }
 0x24f   : > { %v1164_v36 = vsel %vm681_vm6, %v3702_v60, %v1153_v51  ;;  %v1165_v14 = vsel %vm681_vm6, %v1153_v51, %v1155_v40  ;;  %v1827_v21 = vld [vmem:[#allocation2 + $0x1a8] sm:$0xff]  ;;  %v1826_v7 = vld [vmem:[#allocation2 + $0x1a0] sm:$0xff] }
 0x250   : > { %1180 = vst [vmem:[#allocation2 + $0x1e0] sm:$0xf0] %v1164_v36  ;;  %1181 = vst [vmem:[#allocation2 + $0x1e8] sm:$0xf0] %v1165_v14 }
 0x252   : > { %v989_v49 = vpop.permute.xlu1 %988  ;;  %v987_v32 = vpop.permute.xlu0 %986 }
 0x253   : > { %v996_v41 = vsel %vm509_vm3, %v985_v25, %v987_v32  ;;  %v997_v53 = vsel %vm509_vm3, %v987_v32, %v989_v49 }
 0x254   : > { %1012 = vst [vmem:[#allocation2 + $0x1b0] sm:$0xf] %v996_v41  ;;  %1013 = vst [vmem:[#allocation2 + $0x1b8] sm:$0xf] %v997_v53 }
 0x256   : > { %v1046_v54 = vpop.permute.xlu1 %1045  ;;  %v1044_v55 = vpop.permute.xlu0 %1043 }
 0x257   : > { %v1053_v43 = vsel %vm566_vm4, %v1042_v9, %v1044_v55  ;;  %v1054_v59 = vsel %vm566_vm4, %v1044_v55, %v1046_v54  ;;  %v1835_v60 = vld [vmem:[#allocation2 + $0x1e8] sm:$0xff]  ;;  %v1834_v58 = vld [vmem:[#allocation2 + $0x1e0] sm:$0xff] }
 0x258   : > { %1069 = vst [vmem:[#allocation2 + $0x1b0] sm:$0xf0] %v1053_v43  ;;  %1070 = vst [vmem:[#allocation2 + $0x1b8] sm:$0xf0] %v1054_v59  ;;  %v2558_v62 = vpack.c.bf16 %v1835_v60, %v1827_v21  ;;  %v2560_v2 = vpack.c.bf16 %v1834_v58, %v1826_v7 }
 0x25a   : > { %v1102_v4 = vpop.permute.xlu1 %1101  ;;  %v1100_v52 = vpop.permute.xlu0 %1099  ;;  %2559 = vmatprep.subr.bf16.mxu0 %v2558_v62 }
 0x25b   : > { %v1109_v63 = vsel %vm624_vm5, %v1098_v35, %v1100_v52  ;;  %v1110_v0 = vsel %vm624_vm5, %v1100_v52, %v1102_v4  ;;  %2561 = vmatpush1.bf16.msra.mxu0 %v2560_v2 }
 0x25c   : > { %1125 = vst [vmem:[#allocation2 + $0x1f0] sm:$0xf] %v1109_v63  ;;  %1126 = vst [vmem:[#allocation2 + $0x1f8] sm:$0xf] %v1110_v0 }
 0x25e   : > { %v1159_v20 = vpop.permute.xlu1 %1158  ;;  %v1157_v39 = vpop.permute.xlu0 %1156 }
 0x25f   : > { %v1166_v16 = vsel %vm681_vm6, %v1155_v40, %v1157_v39  ;;  %v1167_v26 = vsel %vm681_vm6, %v1157_v39, %v1159_v20  ;;  %v1829_v6 = vld [vmem:[#allocation2 + $0x1b8] sm:$0xff]  ;;  %v1828_v10 = vld [vmem:[#allocation2 + $0x1b0] sm:$0xff] }
 0x260   : > { %1182 = vst [vmem:[#allocation2 + $0x1f0] sm:$0xf0] %v1166_v16  ;;  %1183 = vst [vmem:[#allocation2 + $0x1f8] sm:$0xf0] %v1167_v26 }
 0x262   : > { %v1211_v27 = vpop.permute.xlu1 %1210  ;;  %v1209_v29 = vpop.permute.xlu0 %1208 }
 0x263   : > { %v1220_v31 = vsel %vm739_vm7, %v3739_v23, %v1209_v29  ;;  %v1221_v12 = vsel %vm739_vm7, %v1209_v29, %v1211_v27 }
 0x264   : > { %1236 = vst [vmem:[#allocation2 + $0x220] sm:$0xf] %v1220_v31  ;;  %1237 = vst [vmem:[#allocation2 + $0x228] sm:$0xf] %v1221_v12 }
 0x266   : > { %v1268_v11 = vpop.permute.xlu1 %1267  ;;  %v1266_v3 = vpop.permute.xlu0 %1265 }
 0x267   : > { %v1277_v15 = vsel %vm796_vm8, %v3748_v57, %v1266_v3  ;;  %v1278_v25 = vsel %vm796_vm8, %v1266_v3, %v1268_v11  ;;  %v1837_v8 = vld [vmem:[#allocation2 + $0x1f8] sm:$0xff]  ;;  %v1836_v34 = vld [vmem:[#allocation2 + $0x1f0] sm:$0xff] }
 0x268   : > { %1293 = vst [vmem:[#allocation2 + $0x220] sm:$0xf0] %v1277_v15  ;;  %1294 = vst [vmem:[#allocation2 + $0x228] sm:$0xf0] %v1278_v25  ;;  %v2590_v9 = vpack.c.bf16 %v1837_v8, %v1829_v6  ;;  %v2592_v24 = vpack.c.bf16 %v1836_v34, %v1828_v10 }
 0x26a   : > { %v1349_v23 = vpop.permute.xlu1 %1348  ;;  %2591 = vmatprep.subr.bf16.mxu1 %v2590_v9 }
 0x26b   : > { %v1347_v22 = vpop.permute.xlu0 %1346  ;;  %2593 = vmatpush1.bf16.msra.mxu1 %v2592_v24 }
 0x26c   : > { %v1358_v37 = vsel %vm394_vm1, %v3757_v19, %v1347_v22  ;;  %v1359_v17 = vsel %vm394_vm1, %v1347_v22, %v1349_v23 }
 0x26d   : > { %1374 = vst [vmem:[#allocation2 + $0x260] sm:$0xf0] %v1358_v37  ;;  %1375 = vst [vmem:[#allocation2 + $0x268] sm:$0xf0] %v1359_v17 }
 0x26e   : > { %v1215_v57 = vpop.permute.xlu1 %1214 }
 0x26f   : > { %v1213_v47 = vpop.permute.xlu0 %1212  ;;  %v1843_v35 = vld [vmem:[#allocation2 + $0x228] sm:$0xff]  ;;  %v1842_v56 = vld [vmem:[#allocation2 + $0x220] sm:$0xff] }
 0x270   : > { %v1222_v42 = vsel %vm739_vm7, %v1211_v27, %v1213_v47  ;;  %v1223_v44 = vsel %vm739_vm7, %v1213_v47, %v1215_v57 }
 0x271   : > { %1238 = vst [vmem:[#allocation2 + $0x230] sm:$0xf] %v1222_v42  ;;  %1239 = vst [vmem:[#allocation2 + $0x238] sm:$0xf] %v1223_v44 }
 0x272   : > { %v1272_v45 = vpop.permute.xlu1 %1271 }
 0x273   : > { %v1270_v50 = vpop.permute.xlu0 %1269 }
 0x274   : > { %v1279_v46 = vsel %vm796_vm8, %v1268_v11, %v1270_v50  ;;  %v1280_v19 = vsel %vm796_vm8, %v1270_v50, %v1272_v45  ;;  %v1851_v48 = vld [vmem:[#allocation2 + $0x268] sm:$0xff]  ;;  %v1850_v40 = vld [vmem:[#allocation2 + $0x260] sm:$0xff] }
 0x275   : > { %1295 = vst [vmem:[#allocation2 + $0x230] sm:$0xf0] %v1279_v46  ;;  %1296 = vst [vmem:[#allocation2 + $0x238] sm:$0xf0] %v1280_v19  ;;  %v2562_v51 = vpack.c.bf16 %v1851_v48, %v1843_v35  ;;  %v2564_v36 = vpack.c.bf16 %v1850_v40, %v1842_v56 }
 0x276   : > { %v1353_v14 = vpop.permute.xlu1 %1352 }
 0x277   : > { %v1351_v49 = vpop.permute.xlu0 %1350  ;;  %2563 = vmatprep.subr.bf16.mxu0 %v2562_v51 }
 0x278   : > { %v1360_v32 = vsel %vm394_vm1, %v1349_v23, %v1351_v49  ;;  %v1361_v41 = vsel %vm394_vm1, %v1351_v49, %v1353_v14  ;;  %2565 = vmatpush1.bf16.msra.mxu0 %v2564_v36 }
 0x279   : > { %1376 = vst [vmem:[#allocation2 + $0x270] sm:$0xf0] %v1360_v32  ;;  %1377 = vst [vmem:[#allocation2 + $0x278] sm:$0xf0] %v1361_v41 }
 0x27a   : > { %v1405_v53 = vpop.permute.xlu1 %1404 }
 0x27b   : > { %v1403_v54 = vpop.permute.xlu0 %1402 }
 0x27c   : > { %v1414_v55 = vsel %vm451_vm2, %v3805_v61, %v1403_v54  ;;  %v1415_v21 = vsel %vm451_vm2, %v1403_v54, %v1405_v53  ;;  %v1845_v60 = vld [vmem:[#allocation2 + $0x238] sm:$0xff]  ;;  %v1844_v2 = vld [vmem:[#allocation2 + $0x230] sm:$0xff] }
 0x27d   : > { %1430 = vst [vmem:[#allocation2 + $0x2a0] sm:$0xf] %v1414_v55  ;;  %1431 = vst [vmem:[#allocation2 + $0x2a8] sm:$0xf] %v1415_v21 }
 0x27e   : > { %v1462_v43 = vpop.permute.xlu1 %1461 }
 0x27f   : > { %v1460_v59 = vpop.permute.xlu0 %1459 }
 0x280   : > { %v1471_v7 = vsel %vm509_vm3, %v3814_v5, %v1460_v59  ;;  %v1472_v58 = vsel %vm509_vm3, %v1460_v59, %v1462_v43  ;;  %v1853_v62 = vld [vmem:[#allocation2 + $0x278] sm:$0xff]  ;;  %v1852_v4 = vld [vmem:[#allocation2 + $0x270] sm:$0xff] }
 0x281   : > { %1487 = vst [vmem:[#allocation2 + $0x2a0] sm:$0xf0] %v1471_v7  ;;  %1488 = vst [vmem:[#allocation2 + $0x2a8] sm:$0xf0] %v1472_v58  ;;  %v2594_v52 = vpack.c.bf16 %v1853_v62, %v1845_v60  ;;  %v2596_v63 = vpack.c.bf16 %v1852_v4, %v1844_v2 }
 0x282   : > { %v1518_v61 = vpop.permute.xlu1 %1517 }
 0x283   : > { %v1516_v0 = vpop.permute.xlu0 %1515  ;;  %2595 = vmatprep.subr.bf16.mxu1 %v2594_v52 }
 0x284   : > { %v1527_v20 = vsel %vm566_vm4, %v3826_v28, %v1516_v0  ;;  %v1528_v39 = vsel %vm566_vm4, %v1516_v0, %v1518_v61  ;;  %2597 = vmatpush1.bf16.msra.mxu1 %v2596_v63 }
 0x285   : > { %1543 = vst [vmem:[#allocation2 + $0x2e0] sm:$0xf] %v1527_v20  ;;  %1544 = vst [vmem:[#allocation2 + $0x2e8] sm:$0xf] %v1528_v39 }
 0x286   : > { %v1575_v5 = vpop.permute.xlu1 %1574 }
 0x287   : > { %v1573_v16 = vpop.permute.xlu0 %1572 }
 0x288   : > { %v1584_v26 = vsel %vm624_vm5, %v3835_v1, %v1573_v16  ;;  %v1585_v27 = vsel %vm624_vm5, %v1573_v16, %v1575_v5  ;;  %v1859_v6 = vld [vmem:[#allocation2 + $0x2a8] sm:$0xff]  ;;  %v1858_v8 = vld [vmem:[#allocation2 + $0x2a0] sm:$0xff] }
 0x289   : > { %1600 = vst [vmem:[#allocation2 + $0x2e0] sm:$0xf0] %v1584_v26  ;;  %1601 = vst [vmem:[#allocation2 + $0x2e8] sm:$0xf0] %v1585_v27 }
 0x28a   : > { %v1409_v29 = vpop.permute.xlu1 %1408 }
 0x28b   : > { %v1407_v31 = vpop.permute.xlu0 %1406 }
 0x28c   : > { %v1416_v12 = vsel %vm451_vm2, %v1405_v53, %v1407_v31  ;;  %v1417_v28 = vsel %vm451_vm2, %v1407_v31, %v1409_v29 }
 0x28d   : > { %1432 = vst [vmem:[#allocation2 + $0x2b0] sm:$0xf] %v1416_v12  ;;  %1433 = vst [vmem:[#allocation2 + $0x2b8] sm:$0xf] %v1417_v28  ;;  %v2196_v12 = vlaneseq }
 0x28e   : > { %v1466_v11 = vpop.permute.xlu1 %1465 }
 0x28f   : > { %v1464_v3 = vpop.permute.xlu0 %1463  ;;  %v2197_v28 = vshrl.u32 %v2196_v12, 7 }
 0x290   : > { %v1473_v15 = vsel %vm509_vm3, %v1462_v43, %v1464_v3  ;;  %v1474_v25 = vsel %vm509_vm3, %v1464_v3, %v1466_v11  ;;  %v1867_v1 = vld [vmem:[#allocation2 + $0x2e8] sm:$0xff]  ;;  %v1866_v10 = vld [vmem:[#allocation2 + $0x2e0] sm:$0xff] }
 0x291   : > { %1489 = vst [vmem:[#allocation2 + $0x2b0] sm:$0xf0] %v1473_v15  ;;  %1490 = vst [vmem:[#allocation2 + $0x2b8] sm:$0xf0] %v1474_v25  ;;  %v2566_v34 = vpack.c.bf16 %v1867_v1, %v1859_v6  ;;  %v2568_v9 = vpack.c.bf16 %v1866_v10, %v1858_v8  ;;  %v2198_v11 = vsub.s32 0, %v2197_v28  ;;  %v2194_v3 = vld [vmem:[#allocation8] sm:$0xff] }
 0x292   : > { %v1522_v24 = vpop.permute.xlu1 %1521  ;;  %v2202_v6 = vsub.s32 1, %v2197_v28 }
 0x293   : > { %v1520_v23 = vpop.permute.xlu0 %1519  ;;  %2567 = vmatprep.subr.bf16.mxu0 %v2566_v34  ;;  %v2199_v15 = vrot.slane %v2194_v3, %v2198_v11 }
 0x294   : > { %v1529_v22 = vsel %vm566_vm4, %v1518_v61, %v1520_v23  ;;  %v1530_v37 = vsel %vm566_vm4, %v1520_v23, %v1522_v24  ;;  %2569 = vmatpush1.bf16.msra.mxu0 %v2568_v9  ;;  %v2203_v25 = vrot.slane %v2194_v3, %v2202_v6 }
 0x295   : > { %1545 = vst [vmem:[#allocation2 + $0x2f0] sm:$0xf] %v1529_v22  ;;  %1546 = vst [vmem:[#allocation2 + $0x2f8] sm:$0xf] %v1530_v37  ;;  %v2206_v22 = vsub.s32 2, %v2197_v28 }
 0x296   : > { %v1579_v17 = vpop.permute.xlu1 %1578 }
 0x297   : > { %v1577_v57 = vpop.permute.xlu0 %1576  ;;  %v2207_v37 = vrot.slane %v2194_v3, %v2206_v22 }
 0x298   : > { %v1586_v47 = vsel %vm624_vm5, %v1575_v5, %v1577_v57  ;;  %v1587_v42 = vsel %vm624_vm5, %v1577_v57, %v1579_v17  ;;  %v1861_v48 = vld [vmem:[#allocation2 + $0x2b8] sm:$0xff]  ;;  %v1860_v36 = vld [vmem:[#allocation2 + $0x2b0] sm:$0xff] }
 0x299   : > { %1602 = vst [vmem:[#allocation2 + $0x2f0] sm:$0xf0] %v1586_v47  ;;  %1603 = vst [vmem:[#allocation2 + $0x2f8] sm:$0xf0] %v1587_v42 }
 0x29a   : > { %v1631_v44 = vpop.permute.xlu1 %1630 }
 0x29b   : > { %v1629_v45 = vpop.permute.xlu0 %1628 }
 0x29c   : > { %v1640_v50 = vsel %vm681_vm6, %v3866_v13, %v1629_v45  ;;  %v1641_v35 = vsel %vm681_vm6, %v1629_v45, %v1631_v44 }
 0x29d   : > { %1656 = vst [vmem:[#allocation2 + $0x320] sm:$0xf] %v1640_v50  ;;  %1657 = vst [vmem:[#allocation2 + $0x328] sm:$0xf] %v1641_v35 }
 0x29e   : > { %v1688_v46 = vpop.permute.xlu1 %1687 }
 0x29f   : > { %v1686_v19 = vpop.permute.xlu0 %1685 }
 0x2a0   : > { %v1697_v56 = vsel %vm739_vm7, %v3875_v30, %v1686_v19  ;;  %v1698_v40 = vsel %vm739_vm7, %v1686_v19, %v1688_v46  ;;  %v1869_v51 = vld [vmem:[#allocation2 + $0x2f8] sm:$0xff]  ;;  %v1868_v14 = vld [vmem:[#allocation2 + $0x2f0] sm:$0xff] }
 0x2a1   : > { %1713 = vst [vmem:[#allocation2 + $0x320] sm:$0xf0] %v1697_v56  ;;  %1714 = vst [vmem:[#allocation2 + $0x328] sm:$0xf0] %v1698_v40  ;;  %v2598_v49 = vpack.c.bf16 %v1869_v51, %v1861_v48  ;;  %v2600_v32 = vpack.c.bf16 %v1868_v14, %v1860_v36  ;;  %v2214_v56 = vsub.s32 4, %v2197_v28  ;;  %v2218_v40 = vsub.s32 5, %v2197_v28 }
 0x2a2   : > { %v1744_v13 = vpop.permute.xlu1 %1743 }
 0x2a3   : > { %v1742_v41 = vpop.permute.xlu0 %1741  ;;  %2599 = vmatprep.subr.bf16.mxu1 %v2598_v49  ;;  %v2215_v51 = vrot.slane %v2194_v3, %v2214_v56  ;;  %v2219_v36 = vrot.slane %v2194_v3, %v2218_v40 }
 0x2a4   : > { %v1753_v53 = vsel %vm796_vm8, %v3888_v33, %v1742_v41  ;;  %v1754_v54 = vsel %vm796_vm8, %v1742_v41, %v1744_v13  ;;  %2601 = vmatpush1.bf16.msra.mxu1 %v2600_v32 }
 0x2a5   : > { %1769 = vst [vmem:[#allocation2 + $0x360] sm:$0xf] %v1753_v53  ;;  %1770 = vst [vmem:[#allocation2 + $0x368] sm:$0xf] %v1754_v54 }
 0x2a6   : > { %v1635_v30 = vpop.permute.xlu1 %1634 }
 0x2a7   : > { %v1633_v55 = vpop.permute.xlu0 %1632 }
 0x2a8   : > { %v1642_v21 = vsel %vm681_vm6, %v1631_v44, %v1633_v55  ;;  %v1643_v43 = vsel %vm681_vm6, %v1633_v55, %v1635_v30  ;;  %v1875_v7 = vld [vmem:[#allocation2 + $0x328] sm:$0xff]  ;;  %v1874_v2 = vld [vmem:[#allocation2 + $0x320] sm:$0xff] }
 0x2a9   : > { %1658 = vst [vmem:[#allocation2 + $0x330] sm:$0xf] %v1642_v21  ;;  %1659 = vst [vmem:[#allocation2 + $0x338] sm:$0xf] %v1643_v43  ;;  %v2222_v21 = vsub.s32 6, %v2197_v28  ;;  %v2226_v43 = vsub.s32 7, %v2197_v28 }
 0x2aa   : > { %v1692_v59 = vpop.permute.xlu1 %1691 }
 0x2ab   : > { %v1690_v60 = vpop.permute.xlu0 %1689 }
 0x2ac   : > { %v1699_v58 = vsel %vm739_vm7, %v1688_v46, %v1690_v60  ;;  %v1700_v33 = vsel %vm739_vm7, %v1690_v60, %v1692_v59  ;;  %v1883_v62 = vld [vmem:[#allocation2 + $0x368] sm:$0xff]  ;;  %v1882_v4 = vld [vmem:[#allocation2 + $0x360] sm:$0xff]  ;;  %v2223_v60 = vrot.slane %v2194_v3, %v2222_v21 }
 0x2ad   : > { %1715 = vst [vmem:[#allocation2 + $0x330] sm:$0xf0] %v1699_v58  ;;  %1716 = vst [vmem:[#allocation2 + $0x338] sm:$0xf0] %v1700_v33  ;;  %v2570_v52 = vpack.c.bf16 %v1883_v62, %v1875_v7  ;;  %v2572_v63 = vpack.c.bf16 %v1882_v4, %v1874_v2  ;;  %v2227_v7 = vrot.slane %v2194_v3, %v2226_v43 }
 0x2ae   : > { %v1748_v61 = vpop.permute.xlu1 %1747 }
 0x2af   : > { %v1746_v0 = vpop.permute.xlu0 %1745  ;;  %2571 = vmatprep.subr.bf16.mxu0 %v2570_v52 }
 0x2b0   : > { %v1755_v20 = vsel %vm796_vm8, %v1744_v13, %v1746_v0  ;;  %v1756_v39 = vsel %vm796_vm8, %v1746_v0, %v1748_v61  ;;  %2573 = vmatpush1.bf16.msra.mxu0 %v2572_v63 }
 0x2b1   : > { %1771 = vst [vmem:[#allocation2 + $0x370] sm:$0xf] %v1755_v20  ;;  %1772 = vst [vmem:[#allocation2 + $0x378] sm:$0xf] %v1756_v39  ;;  %2575 = vmatprep.subr.bf16.mxu0 %v2965_v18 }
 0x2b4   : > { %2577 = vmatpush1.bf16.msra.mxu0 %v2965_v18  ;;  %v1877_v5 = vld [vmem:[#allocation2 + $0x338] sm:$0xff]  ;;  %v1876_v26 = vld [vmem:[#allocation2 + $0x330] sm:$0xff] }
 0x2b7   : > { %2109 = vmatmul.mubr.f32.vlgmr.msra.gmra.mrb[2].mxu0 %v3903_v38 }
 0x2b8   : > { %v1885_v16 = vld [vmem:[#allocation2 + $0x378] sm:$0xff]  ;;  %v1884_v27 = vld [vmem:[#allocation2 + $0x370] sm:$0xff] }
 0x2b9   : > { %v2602_v29 = vpack.c.bf16 %v1885_v16, %v1877_v5  ;;  %v2604_v31 = vpack.c.bf16 %v1884_v27, %v1876_v26 }
 0x2bb   : > { %2603 = vmatprep.subr.bf16.mxu1 %v2602_v29 }
 0x2bc   : > { %2605 = vmatpush1.bf16.msra.mxu1 %v2604_v31 }
 0x2bd   : > { %2607 = vmatprep.subr.bf16.mxu1 %v2965_v18 }
 0x2c0   : > { %2609 = vmatpush1.bf16.msra.mxu1 %v2965_v18 }
 0x2c3   : > { %2180 = vmatmul.mubr.f32.vlgmr.msra.gmra.mrb[2].mxu1 %v3903_v38  ;;  %v2210_v38 = vsub.s32 3, %v2197_v28 }
 0x2c5   : > { %v2211_v17 = vrot.slane %v2194_v3, %v2210_v38 }
 0x2d1   : > { %v1968_v1 = vpop.f32.mrb[0].mxu0 }
 0x2d2   : > { %2186 = vst [vmem:[%s3222_s18] sm:$0xff] %v1968_v1  ;;  %v2236_v8 = vmul.f32 %v2199_v15, %v1968_v1  ;;  %v1970_v10 = vpop.f32.mrb[1].mxu0 }
 0x2d3   : > { %2187 = vst [vmem:[%s3222_s18 + $0x8] sm:$0xff] %v1970_v10  ;;  %v2237_v34 = vmul.f32 %v2203_v25, %v1970_v10 }
 0x2d4   : > { %v2258_v9 = vmul.f32 %v2236_v8, %v1968_v1 }
 0x2d5   : > { %v2245_v24 = vadd.f32 %v2237_v34, %v2236_v8  ;;  %v2259_v18 = vmul.f32 %v2237_v34, %v1970_v10 }
 0x2d7   : > { %v2266_v23 = vadd.f32 %v2259_v18, %v2258_v9 }
 0x2dd   : > { %v2039_v57 = vpop.f32.mrb[0].mxu1 }
 0x2de   : > { %2188 = vst [vmem:[%s3222_s18 + $0x10] sm:$0xff] %v2039_v57  ;;  %v2238_v47 = vmul.f32 %v2207_v37, %v2039_v57  ;;  %v2041_v42 = vpop.f32.mrb[1].mxu1 }
 0x2df   : > { %2189 = vst [vmem:[%s3222_s18 + $0x18] sm:$0xff] %v2041_v42  ;;  %v2239_v44 = vmul.f32 %v2211_v17, %v2041_v42 }
 0x2e0   : > { %v2246_v45 = vadd.f32 %v2245_v24, %v2238_v47  ;;  %v2260_v50 = vmul.f32 %v2238_v47, %v2039_v57 }
 0x2e1   : > { %v2261_v35 = vmul.f32 %v2239_v44, %v2041_v42 }
 0x2e2   : > { %v2267_v46 = vadd.f32 %v2266_v23, %v2260_v50  ;;  %v2247_v19 = vadd.f32 %v2246_v45, %v2239_v44 }
 0x2e4   : > { %v2268_v48 = vadd.f32 %v2267_v46, %v2261_v35 }
 0x38a   : > { %v2110_v14 = vpop.f32.mrb[2].mxu0 }
 0x38b   : > { %2190 = vst [vmem:[%s3222_s18 + $0x20] sm:$0xff] %v2110_v14  ;;  %v2240_v49 = vmul.f32 %v2215_v51, %v2110_v14  ;;  %v2112_v32 = vpop.f32.mrb[3].mxu0 }
 0x38c   : > { %2191 = vst [vmem:[%s3222_s18 + $0x28] sm:$0xff] %v2112_v32  ;;  %v2241_v13 = vmul.f32 %v2219_v36, %v2112_v32 }
 0x38d   : > { %v2248_v41 = vadd.f32 %v2247_v19, %v2240_v49  ;;  %v2262_v53 = vmul.f32 %v2240_v49, %v2110_v14 }
 0x38e   : > { %v2263_v54 = vmul.f32 %v2241_v13, %v2112_v32 }
 0x38f   : > { %v2269_v30 = vadd.f32 %v2268_v48, %v2262_v53  ;;  %v2249_v55 = vadd.f32 %v2248_v41, %v2241_v13 }
 0x391   : > { %v2270_v59 = vadd.f32 %v2269_v30, %v2263_v54 }
 0x396   : > { %v2181_v58 = vpop.f32.mrb[2].mxu1 }
 0x397   : > { %2192 = vst [vmem:[%s3222_s18 + $0x30] sm:$0xff] %v2181_v58  ;;  %v2242_v33 = vmul.f32 %v2223_v60, %v2181_v58  ;;  %v2183_v62 = vpop.f32.mrb[3].mxu1 }
 0x398   : > { %2193 = vst [vmem:[%s3222_s18 + $0x38] sm:$0xff] %v2183_v62  ;;  %v2243_v2 = vmul.f32 %v2227_v7, %v2183_v62 }
 0x399   : > { %v2250_v4 = vadd.f32 %v2249_v55, %v2242_v33  ;;  %v2264_v52 = vmul.f32 %v2242_v33, %v2181_v58 }
 0x39a   : > { %v2265_v63 = vmul.f32 %v2243_v2, %v2183_v62 }
 0x39b   : > { %v2271_v61 = vadd.f32 %v2270_v59, %v2264_v52  ;;  %v2251_v0 = vadd.f32 %v2250_v4, %v2243_v2 }
 0x39d   : > { %v2272_v20 = vadd.f32 %v2271_v61, %v2265_v63  ;;  %2252 = vadd.xlane.f32.xlu0 %v2251_v0 }
 0x39f   : > { %2273 = vadd.xlane.f32.xlu1 %v2272_v20 }
 0x3a0   : > { %2861 = shalt.err (!%p2858_p11)
}
 0x3a1   : > { %s2862_s22 = scalar_lea.hbm %s4117_s28, 1024  ;;  %s2866_s13 = scalar_lea.hbm %s4172_s3, 4096 }
 0x3a2   : > { %p2863_p1 = scmp.ne.s32.totalorder %s4117_s28, %s2862_s22  ;;  %p2867_p0 = scmp.lt.u32.totalorder %s4117_s28, %s4172_s3 }
 0x3a3   : > { %p2868_p4 = scmp.lt.u32.totalorder %s2866_s13, %s2862_s22  ;;  %p2870_p2 = scmp.lt.u32.totalorder %s2862_s22, %s4117_s28 }
 0x3a4   : > { %p2864_p9 = pnand %p2863_p1, %p3139_p6 }
 0x3a5   : > { %p2869_p10 = por %p2868_p4, %p2867_p0 }
 0x3a6   : > { %p2865_p5 = pneg %p2864_p9 }
 0x3a7   : > { %p2871_p8 = por %p2870_p2, %p2869_p10 }
 0x3a9   : > { %p2872_p13 = pnand %p2871_p8, %p2865_p5 }
 0x3ab   : > { %2875 = shalt.err (!%p2872_p13)
}
 0x3ac   : > { %2624 = dma.vmem_to_hbm [thread:$0]  (%p3139_p6), %s2303_s1, 1024, %s4117_s28, %s2278_s15   ;;  %v2244_v39 = vld [vmem:[%s3215_s6] sm:$0xff]  ;;  %vm2255_vm9 = vcmask 7168  }
 0x3ad   : > { %v2257_v16 = vld [vmem:[%s3220_s23] sm:$0xff] }
 0x42a   : > { %v2253_v5 = vpop.xlane.xlu0 %2252 }
 0x42b   : > { %v2254_v26 = vadd.f32 %v2253_v5, %v2244_v39 }
 0x42c   : > { %v2274_v27 = vpop.xlane.xlu1 %2273 }
 0x42d   : > { %2256 = vst.msk [vmem:[%s3215_s6] sm:$0xff] %vm2255_vm9, %v2254_v26  ;;  %v2275_v29 = vadd.f32 %v2274_v27, %v2257_v16 }
 0x42f   : > { %2276 = vst.msk [vmem:[%s3220_s23] sm:$0xff] %vm2255_vm9, %v2275_v29 }
 0x430 PF: > { %s4206_s12 = sld [smem:[#allocation13_spill]]  ;;  %s4207_s7 = sld [smem:[#allocation15_spill]] }
 0x431   : > { %p2646_p3 = scmp.ge.s32.totalorder %s2950_s25, 2 }
 0x436   : > { %s2320_s11 = sand.u32 1, %s4206_s12   ;;  %p4208_p7 = scmp.ne.s32.totalorder %s4207_s7, 0 }
 0x437   : > { %s2321_s29 = scalar_lea.sflag [#allocation5], %s2320_s11 }
 0x438   : > { %p2638_p12 = pnand %p2646_p3, %p4208_p7 }
 0x43a   : > { %2917 = dma.done.wait (!%p2638_p12), %s2321_s29, 1024  }
 0x43b   : > { %2919 = vsyncadd (!%p2638_p12), %s2321_s29, 4294966272  ;;  %s23_s25 = sadd.s32 1, %s2950_s25   ;;  %s4209_s21 = sld [smem:[#allocation14_spill]] }
 0x43c   : > { %p20_p6 = scmp.ge.s32.totalorder %s23_s25, 6   ;;  %s4210_s23 = sld [smem:[#allocation16_spill]] }
 0x43d   : > { %s4211_s6 = sld [smem:[#allocation17_spill]]  ;;  %s4212_s18 = smov %s2926_s19 }
 0x43e   : > { %s4213_s19 = smov %s2930_s20  ;;  %s4214_s20 = smov %s3158_s14 }
 0x43f   : > { %s4215_s22 = smov %s2946_s24  ;;  %22 = sbr.rel (!%p20_p6) target bundleno = 11 (0xb), region = 113 }
 0x443   : > { %s4216_s24 = smov %s4211_s6 }
 0x446   :  { %2340 = vsyncpa [#allocation4], 1 }
 0x447   :  { %2342 = vsyncpa [#allocation4 + $0x1], 1 }
 0x448   :  { %2343 = vsyncpa [#allocation7], 1 }
 0x449   :  { %2344 = vsyncpa [#allocation5], 1 }
 0x44a   :  { %2346 = vsyncpa [#allocation5 + $0x1], 1 }

</bundles_post_ra>
